<compile_context>
chip_gen: v5e
topology: v5e:2x2
jax: 0.10.0
libtpu: 0.0.40
codegen_flags: <defaults>
</compile_context>

<pallas_src>
import functools

import jax
import jax.numpy as jnp
from jax.experimental import pallas as pl
from jax.experimental.pallas import tpu as pltpu

INPUT_NEURONS = 103
HIDDEN_LAYERS = 3
HIDDEN_NEURONS = int(INPUT_NEURONS * 1.5)  # 154
OUT_NEURONS = 2

# Lane-aligned (padded) sizes used inside the kernel.
IN_PAD = 128       # 103 -> 128
HID_PAD = 256      # 154 -> 256
OUT_PAD = 128      # 2   -> 128 (lane-dense output store)
NEG_PAD = -1e30    # bias for padded output logits -> exp() underflows to exactly 0

MIN_TILE_B = 256   # fills the 256-row MXU M dimension on v6e/v7x
MAX_TILE_B = 2048  # keeps per-stream VMEM to a few MiB


def _default_bf16_elementwise():
    """Use the bf16 bias/ReLU path only on chips with a bf16 VPU/EUP (v6e/v7x)."""
    try:
        kind = jax.devices()[0].device_kind.lower()
    except Exception:
        return True
    return not any(g in kind for g in ("v2", "v3", "v4", "v5"))


def _choose_tile_b(batch):
    """Batch-tile heuristic (swept parameter).

    Large tiles amortize the ~0.35us per-grid-step pipeline overhead and fill
    the 256-row MXU; for big batches the tile is capped so there are >=2 grid
    steps, letting v7x shard batch tiles across its 2 TensorCores.
    """
    if batch <= 2 * MIN_TILE_B:
        return max(8, pl.cdiv(batch, 8) * 8)  # one tile; too small to split usefully
    tile = min(MAX_TILE_B, (batch // 2 // MIN_TILE_B) * MIN_TILE_B)
    return max(tile, MIN_TILE_B)


def perceptron_kernel(x_ref,
                      w0_ref, b0_ref,
                      w1_ref, b1_ref,
                      w2_ref, b2_ref,
                      w3_ref, b3_ref,
                      wo_ref, bo_ref,
                      out_ref, *, bf16_elementwise):
    # ---- input layer: Linear -> Sigmoid (bf16 MXU operands, f32 accumulate) ----
    # Sigmoid as a single EUP op: sigmoid(h) = 0.5 * tanh(0.5 * h) + 0.5.
    h32 = jnp.dot(x_ref[...], w0_ref[...],
                  preferred_element_type=jnp.float32) + b0_ref[...]
    h = (0.5 * jnp.tanh(0.5 * h32) + 0.5).astype(jnp.bfloat16)

    # NOTE: padded hidden lanes (154->256) now hold sigmoid(0) = 0.5; they are
    # cancelled only because every downstream weight matrix pads the matching
    # ROWS with zeros (see _pad_to in the wrapper).  Keep that invariant if the
    # padding scheme ever changes.

    # ---- hidden layers: Linear -> ReLU -> Dropout(0.12) ----
    # TODO(synk): training-mode dropout (p=0.12) not implemented; inference forward is identity.
    for w_ref, b_ref in ((w1_ref, b1_ref), (w2_ref, b2_ref), (w3_ref, b3_ref)):
        acc = jnp.dot(h, w_ref[...], preferred_element_type=jnp.float32)
        if bf16_elementwise:
            # v6e/v7x: bias-add + ReLU in bf16 (VPU packs 2 bf16/lane) -> half the VALU work.
            h = jnp.maximum(acc.astype(jnp.bfloat16) + b_ref[...].astype(jnp.bfloat16), 0.0)
        else:
            # v5e: no bf16 VPU/EUP -> keep elementwise math in f32 (free under the MXU slot).
            h = jnp.maximum(acc + b_ref[...], 0.0).astype(jnp.bfloat16)

    # ---- output layer + softmax over last dim ----
    # Padded output lanes have zero weight columns and a -1e30 bias, so exp()
    # underflows to exactly 0 there and the reduction covers only the 2 real
    # classes; the store stays lane-dense (128 wide) but is bf16 to halve the
    # largest HBM write stream.
    logits = jnp.dot(h, wo_ref[...], preferred_element_type=jnp.float32) + bo_ref[...]
    m = jnp.max(logits, axis=-1, keepdims=True)
    e = jnp.exp(logits - m)
    # approx reciprocal (EUP): rows sum to 1 only to ~2^-12 relative error.
    p = e * pl.reciprocal(jnp.sum(e, axis=-1, keepdims=True), approx=True)
    out_ref[...] = p.astype(out_ref.dtype)


def _pad_to(a, shape, fill=0.0):
    pads = [(0, t - s) for s, t in zip(a.shape, shape)]
    return jnp.pad(a, pads, constant_values=fill)


def perceptron_forward(x, params, tile_b=None, bf16_elementwise=None):
    """x: (B, 103) float32. params: flat list [w0,b0,w1,b1,w2,b2,w3,b3,wo,bo] (unpadded f32)."""
    B = x.shape[0]
    if bf16_elementwise is None:
        bf16_elementwise = _default_bf16_elementwise()
    if tile_b is None:
        tile_b = _choose_tile_b(B)
    bp = pl.cdiv(B, tile_b) * tile_b

    w0, b0, w1, b1, w2, b2, w3, b3, wo, bo = params

    # Host-side lane padding + bf16 weight cast (halves HBM weight/x traffic,
    # native MXU path).  Padded weight ROWS must stay zero (see kernel NOTE).
    x_p = _pad_to(x, (bp, IN_PAD)).astype(jnp.bfloat16)
    w0_p = _pad_to(w0, (IN_PAD, HID_PAD)).astype(jnp.bfloat16)
    b0_p = _pad_to(b0, (1, HID_PAD))
    w1_p = _pad_to(w1, (HID_PAD, HID_PAD)).astype(jnp.bfloat16)
    b1_p = _pad_to(b1, (1, HID_PAD))
    w2_p = _pad_to(w2, (HID_PAD, HID_PAD)).astype(jnp.bfloat16)
    b2_p = _pad_to(b2, (1, HID_PAD))
    w3_p = _pad_to(w3, (HID_PAD, HID_PAD)).astype(jnp.bfloat16)
    b3_p = _pad_to(b3, (1, HID_PAD))
    wo_p = _pad_to(wo, (HID_PAD, OUT_PAD)).astype(jnp.bfloat16)
    bo_p = _pad_to(bo, (1, OUT_PAD), fill=NEG_PAD)
    padded = [w0_p, b0_p, w1_p, b1_p, w2_p, b2_p, w3_p, b3_p, wo_p, bo_p]

    grid = (bp // tile_b,)
    x_spec = pl.BlockSpec((tile_b, IN_PAD), lambda i: (i, 0))
    out_spec = pl.BlockSpec((tile_b, OUT_PAD), lambda i: (i, 0))

    kernel = functools.partial(perceptron_kernel, bf16_elementwise=bf16_elementwise)

    flops = 2 * bp * (IN_PAD * HID_PAD
                      + HIDDEN_LAYERS * HID_PAD * HID_PAD
                      + HID_PAD * OUT_PAD)
    transcendentals = bp * (HID_PAD + OUT_PAD + 1)      # tanh + softmax exp + recip
    bytes_accessed = (x_p.size * x_p.dtype.itemsize
                      + sum(int(p.size) * p.dtype.itemsize for p in padded)
                      + bp * OUT_PAD * 2)               # bf16 output stream

    def _call(single_buffer_params):
        if single_buffer_params:
            # Weights/biases have a constant index_map and are never refetched:
            # single-buffer them to drop the dead second DMA buffer (~600 KiB VMEM).
            param_specs = [pl.BlockSpec(p.shape, lambda i: (0, 0),
                                        pipeline_mode=pl.Buffered(1))
                           for p in padded]
        else:
            param_specs = [pl.BlockSpec(p.shape, lambda i: (0, 0)) for p in padded]
        return pl.pallas_call(
            kernel,
            out_shape=jax.ShapeDtypeStruct((bp, OUT_PAD), jnp.bfloat16),
            grid=grid,
            in_specs=[x_spec] + param_specs,
            out_specs=out_spec,
            compiler_params=pltpu.CompilerParams(
                dimension_semantics=("parallel",),      # v7x: shard batch tiles across 2 TCs
                vmem_limit_bytes=32 * 1024 * 1024),     # safe up to tile_b~2048 on v7x's 64 MiB
            cost_estimate=pl.CostEstimate(flops=flops,
                                          transcendentals=transcendentals,
                                          bytes_accessed=bytes_accessed),
        )(x_p, *padded)

    try:
        out_padded = _call(True)
    except Exception:
        # Fallback: default double-buffered weight DMA.
        out_padded = _call(False)

    return out_padded[:B, :OUT_NEURONS].astype(jnp.float32)


def init_params(key):
    """Deterministic init mimicking PyTorch Linear default (uniform(-1/sqrt(in), 1/sqrt(in)))."""
    dims = [(INPUT_NEURONS, HIDDEN_NEURONS)] \
         + [(HIDDEN_NEURONS, HIDDEN_NEURONS)] * HIDDEN_LAYERS \
         + [(HIDDEN_NEURONS, OUT_NEURONS)]
    params = []
    for (d_in, d_out) in dims:
        key, kw, kb = jax.random.split(key, 3)
        bound = 1.0 / jnp.sqrt(jnp.float32(d_in))
        w = jax.random.uniform(kw, (d_in, d_out), jnp.float32, -bound, bound)
        b = jax.random.uniform(kb, (1, d_out), jnp.float32, -bound, bound)
        params.extend([w, b])
    return params


def reference_forward(x, params, bf16_elementwise=None):
    """Pure-JAX reference mirroring the kernel's mixed-precision math."""
    if bf16_elementwise is None:
        bf16_elementwise = _default_bf16_elementwise()
    w0, b0, w1, b1, w2, b2, w3, b3, wo, bo = params
    cast = lambda a: a.astype(jnp.bfloat16)
    h = jnp.dot(cast(x), cast(w0), preferred_element_type=jnp.float32) + b0
    h = cast(jax.nn.sigmoid(h))
    for w, b in ((w1, b1), (w2, b2), (w3, b3)):
        acc = jnp.dot(h, cast(w), preferred_element_type=jnp.float32)
        if bf16_elementwise:
            h = jnp.maximum(cast(acc) + cast(b), 0.0)
        else:
            h = cast(jnp.maximum(acc + b, 0.0))
    logits = jnp.dot(h, cast(wo), preferred_element_type=jnp.float32) + bo
    return jax.nn.softmax(logits, axis=-1)


if __name__ == "__main__":
    key = jax.random.PRNGKey(0)
    key, kx = jax.random.split(key)
    batch = 8
    x = jax.random.normal(kx, (batch, INPUT_NEURONS), jnp.float32)
    params = init_params(key)

    out = perceptron_forward(x, params)
    out = jax.block_until_ready(out)

    ref = reference_forward(x, params)
    assert out.shape == (batch, OUT_NEURONS)
    assert jnp.allclose(out, ref, atol=1e-2, rtol=1e-2)
    assert jnp.allclose(jnp.sum(out, axis=-1), 1.0, atol=1e-2)

    print("KERNEL_OK")
</pallas_src>

<mosaic_0001>
module attributes {stable_mosaic.version = 11 : i64} {
  func.func @perceptron_kernel(%arg0: i32, %arg1: memref<8x128xbf16, #tpu.memory_space<vmem>>, %arg2: memref<128x256xbf16, #tpu.memory_space<vmem>>, %arg3: memref<1x256xf32, #tpu.memory_space<vmem>>, %arg4: memref<256x256xbf16, #tpu.memory_space<vmem>>, %arg5: memref<1x256xf32, #tpu.memory_space<vmem>>, %arg6: memref<256x256xbf16, #tpu.memory_space<vmem>>, %arg7: memref<1x256xf32, #tpu.memory_space<vmem>>, %arg8: memref<256x256xbf16, #tpu.memory_space<vmem>>, %arg9: memref<1x256xf32, #tpu.memory_space<vmem>>, %arg10: memref<256x128xbf16, #tpu.memory_space<vmem>>, %arg11: memref<1x128xf32, #tpu.memory_space<vmem>>, %arg12: memref<8x128xbf16, #tpu.memory_space<vmem>>) attributes {dimension_semantics = [#tpu.dimension_semantics<parallel>], iteration_bounds = array<i64: 1>, scalar_prefetch = 0 : i64, scratch_operands = 0 : i64, tpu.core_type = #tpu.core_type<tc>, window_params = [{transform_indices = @transform_0, window_bounds = array<i64: 8, 128>}, {pipeline_mode = #tpu.pipeline_mode<synchronous>, transform_indices = @transform_1, window_bounds = array<i64: 128, 256>}, {pipeline_mode = #tpu.pipeline_mode<synchronous>, transform_indices = @transform_2, window_bounds = array<i64: 1, 256>}, {pipeline_mode = #tpu.pipeline_mode<synchronous>, transform_indices = @transform_3, window_bounds = array<i64: 256, 256>}, {pipeline_mode = #tpu.pipeline_mode<synchronous>, transform_indices = @transform_4, window_bounds = array<i64: 1, 256>}, {pipeline_mode = #tpu.pipeline_mode<synchronous>, transform_indices = @transform_5, window_bounds = array<i64: 256, 256>}, {pipeline_mode = #tpu.pipeline_mode<synchronous>, transform_indices = @transform_6, window_bounds = array<i64: 1, 256>}, {pipeline_mode = #tpu.pipeline_mode<synchronous>, transform_indices = @transform_7, window_bounds = array<i64: 256, 256>}, {pipeline_mode = #tpu.pipeline_mode<synchronous>, transform_indices = @transform_8, window_bounds = array<i64: 1, 256>}, {pipeline_mode = #tpu.pipeline_mode<synchronous>, transform_indices = @transform_9, window_bounds = array<i64: 256, 128>}, {pipeline_mode = #tpu.pipeline_mode<synchronous>, transform_indices = @transform_10, window_bounds = array<i64: 1, 128>}, {transform_indices = @transform_11, window_bounds = array<i64: 8, 128>}]} {
    %c0 = arith.constant 0 : index
    %c0_0 = arith.constant 0 : index
    %0 = vector.load %arg1[%c0, %c0_0] : memref<8x128xbf16, #tpu.memory_space<vmem>>, vector<8x128xbf16>
    %c0_1 = arith.constant 0 : index
    %c0_2 = arith.constant 0 : index
    %1 = vector.load %arg2[%c0_1, %c0_2] : memref<128x256xbf16, #tpu.memory_space<vmem>>, vector<128x256xbf16>
    %cst = arith.constant dense<0.000000e+00> : vector<8x256xf32>
    %2 = tpu.matmul %0, %1, %cst {dimension_numbers = #tpu.dot_dimension_numbers<[1], [0], [0], [1], [0, 0, 1, 1], [], []>} : vector<8x128xbf16>, vector<128x256xbf16>, vector<8x256xf32> -> vector<8x256xf32>
    %c0_3 = arith.constant 0 : index
    %c0_4 = arith.constant 0 : index
    %3 = vector.load %arg3[%c0_3, %c0_4] : memref<1x256xf32, #tpu.memory_space<vmem>>, vector<1x256xf32>
    %4 = vector.broadcast %3 : vector<1x256xf32> to vector<8x256xf32>
    %5 = arith.addf %2, %4 : vector<8x256xf32>
    %cst_5 = arith.constant 5.000000e-01 : f32
    %6 = vector.broadcast %cst_5 : f32 to vector<8x256xf32>
    %7 = arith.mulf %6, %5 : vector<8x256xf32>
    %8 = math.tanh %7 : vector<8x256xf32>
    %cst_6 = arith.constant 5.000000e-01 : f32
    %9 = vector.broadcast %cst_6 : f32 to vector<8x256xf32>
    %10 = arith.mulf %9, %8 : vector<8x256xf32>
    %cst_7 = arith.constant 5.000000e-01 : f32
    %11 = vector.broadcast %cst_7 : f32 to vector<8x256xf32>
    %12 = arith.addf %10, %11 : vector<8x256xf32>
    %13 = arith.truncf %12 : vector<8x256xf32> to vector<8x256xbf16>
    %c0_8 = arith.constant 0 : index
    %c0_9 = arith.constant 0 : index
    %14 = vector.load %arg4[%c0_8, %c0_9] : memref<256x256xbf16, #tpu.memory_space<vmem>>, vector<256x256xbf16>
    %cst_10 = arith.constant dense<0.000000e+00> : vector<8x256xf32>
    %15 = tpu.matmul %13, %14, %cst_10 {dimension_numbers = #tpu.dot_dimension_numbers<[1], [0], [0], [1], [0, 0, 1, 1], [], []>} : vector<8x256xbf16>, vector<256x256xbf16>, vector<8x256xf32> -> vector<8x256xf32>
    %16 = arith.truncf %15 : vector<8x256xf32> to vector<8x256xbf16>
    %c0_11 = arith.constant 0 : index
    %c0_12 = arith.constant 0 : index
    %17 = vector.load %arg5[%c0_11, %c0_12] : memref<1x256xf32, #tpu.memory_space<vmem>>, vector<1x256xf32>
    %18 = arith.truncf %17 : vector<1x256xf32> to vector<1x256xbf16>
    %19 = vector.broadcast %18 : vector<1x256xbf16> to vector<8x256xbf16>
    %20 = arith.addf %16, %19 : vector<8x256xbf16>
    %cst_13 = arith.constant 0.000000e+00 : bf16
    %21 = vector.broadcast %cst_13 : bf16 to vector<8x256xbf16>
    %22 = arith.maximumf %20, %21 : vector<8x256xbf16>
    %c0_14 = arith.constant 0 : index
    %c0_15 = arith.constant 0 : index
    %23 = vector.load %arg6[%c0_14, %c0_15] : memref<256x256xbf16, #tpu.memory_space<vmem>>, vector<256x256xbf16>
    %cst_16 = arith.constant dense<0.000000e+00> : vector<8x256xf32>
    %24 = tpu.matmul %22, %23, %cst_16 {dimension_numbers = #tpu.dot_dimension_numbers<[1], [0], [0], [1], [0, 0, 1, 1], [], []>} : vector<8x256xbf16>, vector<256x256xbf16>, vector<8x256xf32> -> vector<8x256xf32>
    %25 = arith.truncf %24 : vector<8x256xf32> to vector<8x256xbf16>
    %c0_17 = arith.constant 0 : index
    %c0_18 = arith.constant 0 : index
    %26 = vector.load %arg7[%c0_17, %c0_18] : memref<1x256xf32, #tpu.memory_space<vmem>>, vector<1x256xf32>
    %27 = arith.truncf %26 : vector<1x256xf32> to vector<1x256xbf16>
    %28 = vector.broadcast %27 : vector<1x256xbf16> to vector<8x256xbf16>
    %29 = arith.addf %25, %28 : vector<8x256xbf16>
    %cst_19 = arith.constant 0.000000e+00 : bf16
    %30 = vector.broadcast %cst_19 : bf16 to vector<8x256xbf16>
    %31 = arith.maximumf %29, %30 : vector<8x256xbf16>
    %c0_20 = arith.constant 0 : index
    %c0_21 = arith.constant 0 : index
    %32 = vector.load %arg8[%c0_20, %c0_21] : memref<256x256xbf16, #tpu.memory_space<vmem>>, vector<256x256xbf16>
    %cst_22 = arith.constant dense<0.000000e+00> : vector<8x256xf32>
    %33 = tpu.matmul %31, %32, %cst_22 {dimension_numbers = #tpu.dot_dimension_numbers<[1], [0], [0], [1], [0, 0, 1, 1], [], []>} : vector<8x256xbf16>, vector<256x256xbf16>, vector<8x256xf32> -> vector<8x256xf32>
    %34 = arith.truncf %33 : vector<8x256xf32> to vector<8x256xbf16>
    %c0_23 = arith.constant 0 : index
    %c0_24 = arith.constant 0 : index
    %35 = vector.load %arg9[%c0_23, %c0_24] : memref<1x256xf32, #tpu.memory_space<vmem>>, vector<1x256xf32>
    %36 = arith.truncf %35 : vector<1x256xf32> to vector<1x256xbf16>
    %37 = vector.broadcast %36 : vector<1x256xbf16> to vector<8x256xbf16>
    %38 = arith.addf %34, %37 : vector<8x256xbf16>
    %cst_25 = arith.constant 0.000000e+00 : bf16
    %39 = vector.broadcast %cst_25 : bf16 to vector<8x256xbf16>
    %40 = arith.maximumf %38, %39 : vector<8x256xbf16>
    %c0_26 = arith.constant 0 : index
    %c0_27 = arith.constant 0 : index
    %41 = vector.load %arg10[%c0_26, %c0_27] : memref<256x128xbf16, #tpu.memory_space<vmem>>, vector<256x128xbf16>
    %cst_28 = arith.constant dense<0.000000e+00> : vector<8x128xf32>
    %42 = tpu.matmul %40, %41, %cst_28 {dimension_numbers = #tpu.dot_dimension_numbers<[1], [0], [0], [1], [0, 0, 1, 1], [], []>} : vector<8x256xbf16>, vector<256x128xbf16>, vector<8x128xf32> -> vector<8x128xf32>
    %c0_29 = arith.constant 0 : index
    %c0_30 = arith.constant 0 : index
    %43 = vector.load %arg11[%c0_29, %c0_30] : memref<1x128xf32, #tpu.memory_space<vmem>>, vector<1x128xf32>
    %44 = vector.broadcast %43 : vector<1x128xf32> to vector<8x128xf32>
    %45 = arith.addf %42, %44 : vector<8x128xf32>
    %cst_31 = arith.constant dense<0xFF800000> : vector<8xf32>
    %46 = vector.multi_reduction <maximumf>, %45, %cst_31 [1] : vector<8x128xf32> to vector<8xf32>
    %47 = vector.shape_cast %46 : vector<8xf32> to vector<8x1xf32>
    %48 = vector.broadcast %47 : vector<8x1xf32> to vector<8x128xf32>
    %49 = arith.subf %45, %48 : vector<8x128xf32>
    %50 = math.exp %49 : vector<8x128xf32>
    %cst_32 = arith.constant dense<0.000000e+00> : vector<8xf32>
    %51 = vector.multi_reduction <add>, %50, %cst_32 [1] : vector<8x128xf32> to vector<8xf32>
    %52 = vector.shape_cast %51 : vector<8xf32> to vector<8x1xf32>
    %53 = tpu.reciprocal %52 {approx = true} : vector<8x1xf32> -> vector<8x1xf32>
    %54 = vector.broadcast %53 : vector<8x1xf32> to vector<8x128xf32>
    %55 = arith.mulf %50, %54 : vector<8x128xf32>
    %56 = arith.truncf %55 : vector<8x128xf32> to vector<8x128xbf16>
    %c0_33 = arith.constant 0 : index
    %c0_34 = arith.constant 0 : index
    %57 = vector.load %arg12[%c0_33, %c0_34] : memref<8x128xbf16, #tpu.memory_space<vmem>>, vector<8x128xbf16>
    tpu.vector_store %arg12[%c0_33, %c0_34], %56 {strides = array<i32>} : memref<8x128xbf16, #tpu.memory_space<vmem>>, vector<8x128xbf16>,
    return
  }
  func.func @transform_0(%arg0: i32) -> (i32, i32) {
    %c0_i32 = arith.constant 0 : i32
    %c0_i32_0 = arith.constant 0 : i32
    return %arg0, %c0_i32 : i32, i32
  }
  func.func @transform_1(%arg0: i32) -> (i32, i32) {
    %c0_i32 = arith.constant 0 : i32
    %c0_i32_0 = arith.constant 0 : i32
    %c0_i32_1 = arith.constant 0 : i32
    return %c0_i32, %c0_i32_0 : i32, i32
  }
  func.func @transform_2(%arg0: i32) -> (i32, i32) {
    %c0_i32 = arith.constant 0 : i32
    %c0_i32_0 = arith.constant 0 : i32
    %c0_i32_1 = arith.constant 0 : i32
    return %c0_i32, %c0_i32_0 : i32, i32
  }
  func.func @transform_3(%arg0: i32) -> (i32, i32) {
    %c0_i32 = arith.constant 0 : i32
    %c0_i32_0 = arith.constant 0 : i32
    %c0_i32_1 = arith.constant 0 : i32
    return %c0_i32, %c0_i32_0 : i32, i32
  }
  func.func @transform_4(%arg0: i32) -> (i32, i32) {
    %c0_i32 = arith.constant 0 : i32
    %c0_i32_0 = arith.constant 0 : i32
    %c0_i32_1 = arith.constant 0 : i32
    return %c0_i32, %c0_i32_0 : i32, i32
  }
  func.func @transform_5(%arg0: i32) -> (i32, i32) {
    %c0_i32 = arith.constant 0 : i32
    %c0_i32_0 = arith.constant 0 : i32
    %c0_i32_1 = arith.constant 0 : i32
    return %c0_i32, %c0_i32_0 : i32, i32
  }
  func.func @transform_6(%arg0: i32) -> (i32, i32) {
    %c0_i32 = arith.constant 0 : i32
    %c0_i32_0 = arith.constant 0 : i32
    %c0_i32_1 = arith.constant 0 : i32
    return %c0_i32, %c0_i32_0 : i32, i32
  }
  func.func @transform_7(%arg0: i32) -> (i32, i32) {
    %c0_i32 = arith.constant 0 : i32
    %c0_i32_0 = arith.constant 0 : i32
    %c0_i32_1 = arith.constant 0 : i32
    return %c0_i32, %c0_i32_0 : i32, i32
  }
  func.func @transform_8(%arg0: i32) -> (i32, i32) {
    %c0_i32 = arith.constant 0 : i32
    %c0_i32_0 = arith.constant 0 : i32
    %c0_i32_1 = arith.constant 0 : i32
    return %c0_i32, %c0_i32_0 : i32, i32
  }
  func.func @transform_9(%arg0: i32) -> (i32, i32) {
    %c0_i32 = arith.constant 0 : i32
    %c0_i32_0 = arith.constant 0 : i32
    %c0_i32_1 = arith.constant 0 : i32
    return %c0_i32, %c0_i32_0 : i32, i32
  }
  func.func @transform_10(%arg0: i32) -> (i32, i32) {
    %c0_i32 = arith.constant 0 : i32
    %c0_i32_0 = arith.constant 0 : i32
    %c0_i32_1 = arith.constant 0 : i32
    return %c0_i32, %c0_i32_0 : i32, i32
  }
  func.func @transform_11(%arg0: i32) -> (i32, i32) {
    %c0_i32 = arith.constant 0 : i32
    %c0_i32_0 = arith.constant 0 : i32
    return %arg0, %c0_i32 : i32, i32
  }
}

module attributes {stable_mosaic.version = 11 : i64} {
  func.func @perceptron_kernel(%arg0: i32, %arg1: memref<8x128xbf16, #tpu.memory_space<vmem>>, %arg2: memref<128x256xbf16, #tpu.memory_space<vmem>>, %arg3: memref<1x256xf32, #tpu.memory_space<vmem>>, %arg4: memref<256x256xbf16, #tpu.memory_space<vmem>>, %arg5: memref<1x256xf32, #tpu.memory_space<vmem>>, %arg6: memref<256x256xbf16, #tpu.memory_space<vmem>>, %arg7: memref<1x256xf32, #tpu.memory_space<vmem>>, %arg8: memref<256x256xbf16, #tpu.memory_space<vmem>>, %arg9: memref<1x256xf32, #tpu.memory_space<vmem>>, %arg10: memref<256x128xbf16, #tpu.memory_space<vmem>>, %arg11: memref<1x128xf32, #tpu.memory_space<vmem>>, %arg12: memref<8x128xbf16, #tpu.memory_space<vmem>>) attributes {dimension_semantics = [#tpu.dimension_semantics<parallel>], iteration_bounds = array<i64: 1>, scalar_prefetch = 0 : i64, scratch_operands = 0 : i64, tpu.core_type = #tpu.core_type<tc>, window_params = [{transform_indices = @transform_0, window_bounds = array<i64: 8, 128>}, {pipeline_mode = #tpu.pipeline_mode<synchronous>, transform_indices = @transform_1, window_bounds = array<i64: 128, 256>}, {pipeline_mode = #tpu.pipeline_mode<synchronous>, transform_indices = @transform_2, window_bounds = array<i64: 1, 256>}, {pipeline_mode = #tpu.pipeline_mode<synchronous>, transform_indices = @transform_3, window_bounds = array<i64: 256, 256>}, {pipeline_mode = #tpu.pipeline_mode<synchronous>, transform_indices = @transform_4, window_bounds = array<i64: 1, 256>}, {pipeline_mode = #tpu.pipeline_mode<synchronous>, transform_indices = @transform_5, window_bounds = array<i64: 256, 256>}, {pipeline_mode = #tpu.pipeline_mode<synchronous>, transform_indices = @transform_6, window_bounds = array<i64: 1, 256>}, {pipeline_mode = #tpu.pipeline_mode<synchronous>, transform_indices = @transform_7, window_bounds = array<i64: 256, 256>}, {pipeline_mode = #tpu.pipeline_mode<synchronous>, transform_indices = @transform_8, window_bounds = array<i64: 1, 256>}, {pipeline_mode = #tpu.pipeline_mode<synchronous>, transform_indices = @transform_9, window_bounds = array<i64: 256, 128>}, {pipeline_mode = #tpu.pipeline_mode<synchronous>, transform_indices = @transform_10, window_bounds = array<i64: 1, 128>}, {transform_indices = @transform_11, window_bounds = array<i64: 8, 128>}]} {
    %c0 = arith.constant 0 : index
    %c0_0 = arith.constant 0 : index
    %0 = vector.load %arg1[%c0, %c0_0] : memref<8x128xbf16, #tpu.memory_space<vmem>>, vector<8x128xbf16>
    %c0_1 = arith.constant 0 : index
    %c0_2 = arith.constant 0 : index
    %1 = vector.load %arg2[%c0_1, %c0_2] : memref<128x256xbf16, #tpu.memory_space<vmem>>, vector<128x256xbf16>
    %cst = arith.constant dense<0.000000e+00> : vector<8x256xf32>
    %2 = tpu.matmul %0, %1, %cst {dimension_numbers = #tpu.dot_dimension_numbers<[1], [0], [0], [1], [0, 0, 1, 1], [], []>} : vector<8x128xbf16>, vector<128x256xbf16>, vector<8x256xf32> -> vector<8x256xf32>
    %c0_3 = arith.constant 0 : index
    %c0_4 = arith.constant 0 : index
    %3 = vector.load %arg3[%c0_3, %c0_4] : memref<1x256xf32, #tpu.memory_space<vmem>>, vector<1x256xf32>
    %4 = vector.broadcast %3 : vector<1x256xf32> to vector<8x256xf32>
    %5 = arith.addf %2, %4 : vector<8x256xf32>
    %cst_5 = arith.constant 5.000000e-01 : f32
    %6 = vector.broadcast %cst_5 : f32 to vector<8x256xf32>
    %7 = arith.mulf %6, %5 : vector<8x256xf32>
    %8 = math.tanh %7 : vector<8x256xf32>
    %cst_6 = arith.constant 5.000000e-01 : f32
    %9 = vector.broadcast %cst_6 : f32 to vector<8x256xf32>
    %10 = arith.mulf %9, %8 : vector<8x256xf32>
    %cst_7 = arith.constant 5.000000e-01 : f32
    %11 = vector.broadcast %cst_7 : f32 to vector<8x256xf32>
    %12 = arith.addf %10, %11 : vector<8x256xf32>
    %13 = arith.truncf %12 : vector<8x256xf32> to vector<8x256xbf16>
    %c0_8 = arith.constant 0 : index
    %c0_9 = arith.constant 0 : index
    %14 = vector.load %arg4[%c0_8, %c0_9] : memref<256x256xbf16, #tpu.memory_space<vmem>>, vector<256x256xbf16>
    %cst_10 = arith.constant dense<0.000000e+00> : vector<8x256xf32>
    %15 = tpu.matmul %13, %14, %cst_10 {dimension_numbers = #tpu.dot_dimension_numbers<[1], [0], [0], [1], [0, 0, 1, 1], [], []>} : vector<8x256xbf16>, vector<256x256xbf16>, vector<8x256xf32> -> vector<8x256xf32>
    %16 = arith.truncf %15 : vector<8x256xf32> to vector<8x256xbf16>
    %c0_11 = arith.constant 0 : index
    %c0_12 = arith.constant 0 : index
    %17 = vector.load %arg5[%c0_11, %c0_12] : memref<1x256xf32, #tpu.memory_space<vmem>>, vector<1x256xf32>
    %18 = arith.truncf %17 : vector<1x256xf32> to vector<1x256xbf16>
    %19 = vector.broadcast %18 : vector<1x256xbf16> to vector<8x256xbf16>
    %20 = arith.addf %16, %19 : vector<8x256xbf16>
    %cst_13 = arith.constant 0.000000e+00 : bf16
    %21 = vector.broadcast %cst_13 : bf16 to vector<8x256xbf16>
    %22 = arith.maximumf %20, %21 : vector<8x256xbf16>
    %c0_14 = arith.constant 0 : index
    %c0_15 = arith.constant 0 : index
    %23 = vector.load %arg6[%c0_14, %c0_15] : memref<256x256xbf16, #tpu.memory_space<vmem>>, vector<256x256xbf16>
    %cst_16 = arith.constant dense<0.000000e+00> : vector<8x256xf32>
    %24 = tpu.matmul %22, %23, %cst_16 {dimension_numbers = #tpu.dot_dimension_numbers<[1], [0], [0], [1], [0, 0, 1, 1], [], []>} : vector<8x256xbf16>, vector<256x256xbf16>, vector<8x256xf32> -> vector<8x256xf32>
    %25 = arith.truncf %24 : vector<8x256xf32> to vector<8x256xbf16>
    %c0_17 = arith.constant 0 : index
    %c0_18 = arith.constant 0 : index
    %26 = vector.load %arg7[%c0_17, %c0_18] : memref<1x256xf32, #tpu.memory_space<vmem>>, vector<1x256xf32>
    %27 = arith.truncf %26 : vector<1x256xf32> to vector<1x256xbf16>
    %28 = vector.broadcast %27 : vector<1x256xbf16> to vector<8x256xbf16>
    %29 = arith.addf %25, %28 : vector<8x256xbf16>
    %cst_19 = arith.constant 0.000000e+00 : bf16
    %30 = vector.broadcast %cst_19 : bf16 to vector<8x256xbf16>
    %31 = arith.maximumf %29, %30 : vector<8x256xbf16>
    %c0_20 = arith.constant 0 : index
    %c0_21 = arith.constant 0 : index
    %32 = vector.load %arg8[%c0_20, %c0_21] : memref<256x256xbf16, #tpu.memory_space<vmem>>, vector<256x256xbf16>
    %cst_22 = arith.constant dense<0.000000e+00> : vector<8x256xf32>
    %33 = tpu.matmul %31, %32, %cst_22 {dimension_numbers = #tpu.dot_dimension_numbers<[1], [0], [0], [1], [0, 0, 1, 1], [], []>} : vector<8x256xbf16>, vector<256x256xbf16>, vector<8x256xf32> -> vector<8x256xf32>
    %34 = arith.truncf %33 : vector<8x256xf32> to vector<8x256xbf16>
    %c0_23 = arith.constant 0 : index
    %c0_24 = arith.constant 0 : index
    %35 = vector.load %arg9[%c0_23, %c0_24] : memref<1x256xf32, #tpu.memory_space<vmem>>, vector<1x256xf32>
    %36 = arith.truncf %35 : vector<1x256xf32> to vector<1x256xbf16>
    %37 = vector.broadcast %36 : vector<1x256xbf16> to vector<8x256xbf16>
    %38 = arith.addf %34, %37 : vector<8x256xbf16>
    %cst_25 = arith.constant 0.000000e+00 : bf16
    %39 = vector.broadcast %cst_25 : bf16 to vector<8x256xbf16>
    %40 = arith.maximumf %38, %39 : vector<8x256xbf16>
    %c0_26 = arith.constant 0 : index
    %c0_27 = arith.constant 0 : index
    %41 = vector.load %arg10[%c0_26, %c0_27] : memref<256x128xbf16, #tpu.memory_space<vmem>>, vector<256x128xbf16>
    %cst_28 = arith.constant dense<0.000000e+00> : vector<8x128xf32>
    %42 = tpu.matmul %40, %41, %cst_28 {dimension_numbers = #tpu.dot_dimension_numbers<[1], [0], [0], [1], [0, 0, 1, 1], [], []>} : vector<8x256xbf16>, vector<256x128xbf16>, vector<8x128xf32> -> vector<8x128xf32>
    %c0_29 = arith.constant 0 : index
    %c0_30 = arith.constant 0 : index
    %43 = vector.load %arg11[%c0_29, %c0_30] : memref<1x128xf32, #tpu.memory_space<vmem>>, vector<1x128xf32>
    %44 = vector.broadcast %43 : vector<1x128xf32> to vector<8x128xf32>
    %45 = arith.addf %42, %44 : vector<8x128xf32>
    %cst_31 = arith.constant dense<0xFF800000> : vector<8xf32>
    %46 = vector.multi_reduction <maximumf>, %45, %cst_31 [1] : vector<8x128xf32> to vector<8xf32>
    %47 = vector.shape_cast %46 : vector<8xf32> to vector<8x1xf32>
    %48 = vector.broadcast %47 : vector<8x1xf32> to vector<8x128xf32>
    %49 = arith.subf %45, %48 : vector<8x128xf32>
    %50 = math.exp %49 : vector<8x128xf32>
    %cst_32 = arith.constant dense<0.000000e+00> : vector<8xf32>
    %51 = vector.multi_reduction <add>, %50, %cst_32 [1] : vector<8x128xf32> to vector<8xf32>
    %52 = vector.shape_cast %51 : vector<8xf32> to vector<8x1xf32>
    %53 = tpu.reciprocal %52 {approx = true} : vector<8x1xf32> -> vector<8x1xf32>
    %54 = vector.broadcast %53 : vector<8x1xf32> to vector<8x128xf32>
    %55 = arith.mulf %50, %54 : vector<8x128xf32>
    %56 = arith.truncf %55 : vector<8x128xf32> to vector<8x128xbf16>
    %c0_33 = arith.constant 0 : index
    %c0_34 = arith.constant 0 : index
    %57 = vector.load %arg12[%c0_33, %c0_34] : memref<8x128xbf16, #tpu.memory_space<vmem>>, vector<8x128xbf16>
    tpu.vector_store %arg12[%c0_33, %c0_34], %56 {strides = array<i32>} : memref<8x128xbf16, #tpu.memory_space<vmem>>, vector<8x128xbf16>,
    return
  }
  func.func @transform_0(%arg0: i32) -> (i32, i32) {
    %c0_i32 = arith.constant 0 : i32
    %c0_i32_0 = arith.constant 0 : i32
    return %arg0, %c0_i32 : i32, i32
  }
  func.func @transform_1(%arg0: i32) -> (i32, i32) {
    %c0_i32 = arith.constant 0 : i32
    %c0_i32_0 = arith.constant 0 : i32
    %c0_i32_1 = arith.constant 0 : i32
    return %c0_i32, %c0_i32_0 : i32, i32
  }
  func.func @transform_2(%arg0: i32) -> (i32, i32) {
    %c0_i32 = arith.constant 0 : i32
    %c0_i32_0 = arith.constant 0 : i32
    %c0_i32_1 = arith.constant 0 : i32
    return %c0_i32, %c0_i32_0 : i32, i32
  }
  func.func @transform_3(%arg0: i32) -> (i32, i32) {
    %c0_i32 = arith.constant 0 : i32
    %c0_i32_0 = arith.constant 0 : i32
    %c0_i32_1 = arith.constant 0 : i32
    return %c0_i32, %c0_i32_0 : i32, i32
  }
  func.func @transform_4(%arg0: i32) -> (i32, i32) {
    %c0_i32 = arith.constant 0 : i32
    %c0_i32_0 = arith.constant 0 : i32
    %c0_i32_1 = arith.constant 0 : i32
    return %c0_i32, %c0_i32_0 : i32, i32
  }
  func.func @transform_5(%arg0: i32) -> (i32, i32) {
    %c0_i32 = arith.constant 0 : i32
    %c0_i32_0 = arith.constant 0 : i32
    %c0_i32_1 = arith.constant 0 : i32
    return %c0_i32, %c0_i32_0 : i32, i32
  }
  func.func @transform_6(%arg0: i32) -> (i32, i32) {
    %c0_i32 = arith.constant 0 : i32
    %c0_i32_0 = arith.constant 0 : i32
    %c0_i32_1 = arith.constant 0 : i32
    return %c0_i32, %c0_i32_0 : i32, i32
  }
  func.func @transform_7(%arg0: i32) -> (i32, i32) {
    %c0_i32 = arith.constant 0 : i32
    %c0_i32_0 = arith.constant 0 : i32
    %c0_i32_1 = arith.constant 0 : i32
    return %c0_i32, %c0_i32_0 : i32, i32
  }
  func.func @transform_8(%arg0: i32) -> (i32, i32) {
    %c0_i32 = arith.constant 0 : i32
    %c0_i32_0 = arith.constant 0 : i32
    %c0_i32_1 = arith.constant 0 : i32
    return %c0_i32, %c0_i32_0 : i32, i32
  }
  func.func @transform_9(%arg0: i32) -> (i32, i32) {
    %c0_i32 = arith.constant 0 : i32
    %c0_i32_0 = arith.constant 0 : i32
    %c0_i32_1 = arith.constant 0 : i32
    return %c0_i32, %c0_i32_0 : i32, i32
  }
  func.func @transform_10(%arg0: i32) -> (i32, i32) {
    %c0_i32 = arith.constant 0 : i32
    %c0_i32_0 = arith.constant 0 : i32
    %c0_i32_1 = arith.constant 0 : i32
    return %c0_i32, %c0_i32_0 : i32, i32
  }
  func.func @transform_11(%arg0: i32) -> (i32, i32) {
    %c0_i32 = arith.constant 0 : i32
    %c0_i32_0 = arith.constant 0 : i32
    return %arg0, %c0_i32 : i32, i32
  }
}

</mosaic_0001>

<bundles_post_ra>
// kernel: tpu_custom_call.1
= control target key start
LH: loop header
LB: loop body
LE: loop exit
PB: predicated region body
PF: predicated region fallthrough
CT: control target
= control target key end

     0   :  { %16 = vsyncpa [#allocation3], 0  ;;  %s2289_s0 = inlined_call_operand.hbm [shape: bf16[8,128], index: 0, kind: input, shape index: {}]   ;;  %s2290_s1 = inlined_call_operand.hbm [shape: bf16[128,256], index: 1, kind: input, shape index: {}]   ;;  %s2291_s2 = inlined_call_operand.hbm [shape: f32[1,256], index: 2, kind: input, shape index: {}]   ;;  %s2292_s3 = inlined_call_operand.hbm [shape: bf16[256,256], index: 3, kind: input, shape index: {}]   ;;  %s2293_s4 = inlined_call_operand.vmem [shape: f32[1,256], index: 4, kind: input, shape index: {}]   ;;  %s2294_s5 = inlined_call_operand.hbm [shape: bf16[256,256], index: 5, kind: input, shape index: {}]   ;;  %s2295_s6 = inlined_call_operand.vmem [shape: f32[1,256], index: 6, kind: input, shape index: {}]   ;;  %s2296_s7 = inlined_call_operand.hbm [shape: bf16[256,256], index: 7, kind: input, shape index: {}]   ;;  %s2297_s8 = inlined_call_operand.vmem [shape: f32[1,256], index: 8, kind: input, shape index: {}]   ;;  %s2298_s9 = inlined_call_operand.hbm [shape: bf16[256,128], index: 9, kind: input, shape index: {}]   ;;  %s2299_s10 = inlined_call_operand.vmem [shape: f32[1,128], index: 10, kind: input, shape index: {}]   ;;  %s2300_s11 = inlined_call_operand.hbm [shape: bf16[8,128], index: 11, kind: output, shape index: {}]  }
   0x1   :  { %17 = vsyncpa [#allocation6], 0 }
   0x2   :  { %18 = vsyncpa [#allocation9], 0 }
   0x3   :  { %19 = vsyncpa [#allocation12], 0  ;;  %s36_s19 = sshll.u32 %s2290_s1, 4  ;;  %s37_s19 = int_to_ptr.hbm [resolvable:$true] %s36_s19 }
   0x4   :  { %20 = vsyncpa [#allocation4], 0  ;;  %s2169_s20 = smov [#allocation5]   ;;  %s60_s24 = sshll.u32 %s2292_s3, 4  ;;  %s61_s24 = int_to_ptr.hbm [resolvable:$true] %s60_s24 }
   0x5   :  { %s38_s21 = sshll.u32 %s2169_s20, 4  ;;  %s2170_s25 = smov 128   ;;  %s39_s21 = int_to_ptr.vmem [resolvable:$true] %s38_s21 }
   0x6   :  { %s2171_s26 = smov 8   ;;  %s2172_s27 = smov [#allocation8]  }
   0x7   :  { %44 = dma.hbm_to_vmem [thread:$0]  %s37_s19, 2048, %s39_s21, [#allocation6], %s2170_s25, %s2170_s25, %s2171_s26  }
   0x8   :  { %s62_s28 = sshll.u32 %s2172_s27, 4  ;;  %s90_s30 = sshll.u32 %s2296_s7, 4  ;;  %s63_s28 = int_to_ptr.vmem [resolvable:$true] %s62_s28  ;;  %s91_s30 = int_to_ptr.hbm [resolvable:$true] %s90_s30 }
   0x9   :  { %68 = dma.hbm_to_vmem [thread:$0]  %s61_s24, 4096, %s63_s28, [#allocation9], %s2170_s25, %s2170_s25, %s2171_s26  }
   0xa   :  { %s26_s13 = sshll.u32 %s2289_s0, 4  ;;  %s2173_s14 = smov [#allocation11]   ;;  %s27_s13 = int_to_ptr.hbm [resolvable:$true] %s26_s13 }
   0xb   :  { %s92_s15 = sshll.u32 %s2173_s14, 4  ;;  %s2174_s16 = smov [#allocation2]   ;;  %s93_s15 = int_to_ptr.vmem [resolvable:$true] %s92_s15 }
   0xc   :  { %98 = dma.hbm_to_vmem [thread:$0]  %s91_s30, 4096, %s93_s15, [#allocation12], %s2170_s25, %s2170_s25, %s2171_s26  }
   0xd   :  { %s28_s7 = sshll.u32 %s2174_s16, 4  ;;  %s50_s19 = sshll.u32 %s2291_s2, 4  ;;  %s29_s7 = int_to_ptr.vmem [resolvable:$true] %s28_s7  ;;  %s51_s19 = int_to_ptr.hbm [resolvable:$true] %s50_s19 }
   0xe   :  { %31 = dma.hbm_to_vmem [thread:$0]  %s27_s13, 64, %s29_s7, [#allocation3]  }
   0xf   :  { %s75_s0 = sshll.u32 %s2294_s5, 4  ;;  %s2175_s22 = smov [#allocation7]   ;;  %s76_s0 = int_to_ptr.hbm [resolvable:$true] %s75_s0 }
  0x10   :  { %s52_s23 = sshll.u32 %s2175_s22, 4  ;;  %s2176_s24 = smov [#allocation10]   ;;  %s53_s23 = int_to_ptr.vmem [resolvable:$true] %s52_s23 }
  0x11   :  { %55 = dma.hbm_to_vmem [thread:$0]  %s51_s19, 32, %s53_s23, [#allocation6]  }
  0x12   :  { %s77_s27 = sshll.u32 %s2176_s24, 4  ;;  %s105_s1 = sshll.u32 %s2298_s9, 4  ;;  %s78_s27 = int_to_ptr.vmem [resolvable:$true] %s77_s27  ;;  %s106_s1 = int_to_ptr.hbm [resolvable:$true] %s105_s1 }
  0x13   :  { %83 = dma.hbm_to_vmem [thread:$0]  %s76_s0, 4096, %s78_s27, [#allocation9], %s2170_s25, %s2170_s25, %s2171_s26  }
  0x14   :  { %s2177_s2 = smov [#allocation13]   ;;  %s2178_s5 = smov 64  }
  0x15   :  { %s107_s30 = sshll.u32 %s2177_s2, 4  ;;  %s2179_s3 = smov 4   ;;  %s108_s30 = int_to_ptr.vmem [resolvable:$true] %s107_s30 }
  0x16   :  { %113 = dma.hbm_to_vmem [thread:$0]  %s106_s1, 2048, %s108_s30, [#allocation12], %s2178_s5, %s2178_s5, %s2179_s3  }
  0x17   :  { %2159 = dma.done.wait [#allocation3], 64  }
  0x18   :  { %2160 = vsyncadd [#allocation3], 4294967232 }
  0x19   :  { %2161 = dma.done.wait [#allocation6], 2080  }
  0x1a   :  { %2162 = vsyncadd [#allocation6], 4294965216 }
  0x1b   :  { %2163 = dma.done.wait [#allocation9], 8192  }
  0x1c   :  { %2164 = vsyncadd [#allocation9], 4294959104 }
  0x1d   :  { %2165 = dma.done.wait [#allocation12], 6144  }
  0x1e   :  { %2166 = vsyncadd [#allocation12], 4294961152  ;;  %v1364_v0 = vld [vmem:[#allocation5 + $0x70] sm:$0xf]  ;;  %v1833_v1 = vld [vmem:[#allocation5 + $0x74] sm:$0xf0] }
  0x1f   :  { %v1832_v2 = vld [vmem:[#allocation5 + $0x74] sm:$0xf]  ;;  %v1365_v3 = vor.u32 %v1833_v1, %v1364_v0  ;;  %v1366_v4 = vld [vmem:[#allocation5 + $0x78] sm:$0xf0]  ;;  %v1356_v5 = vld [vmem:[#allocation5 + $0x60] sm:$0xf] }
  0x20   :  { %v1831_v6 = vld [vmem:[#allocation5 + $0x64] sm:$0xf0]  ;;  %v1369_v7 = vor.u32 %v1832_v2, %v1366_v4  ;;  %v1830_v8 = vld [vmem:[#allocation5 + $0x64] sm:$0xf]  ;;  %v1358_v9 = vld [vmem:[#allocation5 + $0x68] sm:$0xf0] }
  0x21   :  { %247 = vmatpush.bf16.msra.mxu0 %v1365_v3  ;;  %v1357_v10 = vor.u32 %v1831_v6, %v1356_v5  ;;  %v1361_v11 = vor.u32 %v1830_v8, %v1358_v9  ;;  %v1348_v12 = vld [vmem:[#allocation5 + $0x50] sm:$0xf]  ;;  %v1829_v13 = vld [vmem:[#allocation5 + $0x54] sm:$0xf0]  ;;  %v1828_v14 = vld [vmem:[#allocation5 + $0x54] sm:$0xf] }
  0x22   :  { %260 = vmatpush.bf16.msra.mxu1 %v1369_v7  ;;  %v1350_v15 = vld [vmem:[#allocation5 + $0x58] sm:$0xf0]  ;;  %v1349_v16 = vor.u32 %v1829_v13, %v1348_v12  ;;  %v1340_v18 = vld [vmem:[#allocation5 + $0x40] sm:$0xf]  ;;  %v1827_v19 = vld [vmem:[#allocation5 + $0x44] sm:$0xf0] }
  0x23   :  { %v1353_v17 = vor.u32 %v1828_v14, %v1350_v15  ;;  %v1826_v20 = vld [vmem:[#allocation5 + $0x44] sm:$0xf]  ;;  %v1342_v21 = vld [vmem:[#allocation5 + $0x48] sm:$0xf0]  ;;  %v1341_v22 = vor.u32 %v1827_v19, %v1340_v18  ;;  %v1428_v23 = vld [vmem:[#allocation8 + $0x70] sm:$0xf] }
  0x24   :  { %v1849_v24 = vld [vmem:[#allocation8 + $0x74] sm:$0xf0]  ;;  %v1492_v25 = vld [vmem:[#allocation8 + $0xf0] sm:$0xf]  ;;  %v1345_v26 = vor.u32 %v1826_v20, %v1342_v21  ;;  %v1420_v34 = vld [vmem:[#allocation8 + $0x60] sm:$0xf] }
  0x25   :  { %248 = vmatpush.bf16.msra.mxu0 %v1357_v10  ;;  %v1332_v27 = vld [vmem:[#allocation5 + $0x30] sm:$0xf]  ;;  %v1825_v28 = vld [vmem:[#allocation5 + $0x34] sm:$0xf0]  ;;  %v1429_v29 = vor.u32 %v1849_v24, %v1428_v23  ;;  %v1824_v31 = vld [vmem:[#allocation5 + $0x34] sm:$0xf] }
  0x26   :  { %261 = vmatpush.bf16.msra.mxu1 %v1361_v11  ;;  %v1865_v30 = vld [vmem:[#allocation8 + $0xf4] sm:$0xf0]  ;;  %v1847_v35 = vld [vmem:[#allocation8 + $0x64] sm:$0xf0]  ;;  %v1484_v36 = vld [vmem:[#allocation8 + $0xe0] sm:$0xf]  ;;  %v1333_v38 = vor.u32 %v1825_v28, %v1332_v27 }
  0x27   :  { %v1334_v32 = vld [vmem:[#allocation5 + $0x38] sm:$0xf0]  ;;  %v1493_v33 = vor.u32 %v1865_v30, %v1492_v25  ;;  %475 = vmatpush.bf16.msra.mxu2 %v1429_v29  ;;  %v1863_v37 = vld [vmem:[#allocation8 + $0xe4] sm:$0xf0]  ;;  %v1324_v39 = vld [vmem:[#allocation5 + $0x20] sm:$0xf]  ;;  %v1421_v41 = vor.u32 %v1847_v35, %v1420_v34 }
  0x28   :  { %v1823_v40 = vld [vmem:[#allocation5 + $0x24] sm:$0xf0]  ;;  %v1485_v42 = vor.u32 %v1863_v37, %v1484_v36  ;;  %v1337_v43 = vor.u32 %v1824_v31, %v1334_v32  ;;  %v1822_v44 = vld [vmem:[#allocation5 + $0x24] sm:$0xf]  ;;  %v1412_v45 = vld [vmem:[#allocation8 + $0x50] sm:$0xf] }
  0x29   :  { %249 = vmatpush.bf16.msra.mxu0 %v1349_v16  ;;  %488 = vmatpush.bf16.msra.mxu3 %v1493_v33  ;;  %v1845_v46 = vld [vmem:[#allocation8 + $0x54] sm:$0xf0]  ;;  %v1326_v47 = vld [vmem:[#allocation5 + $0x28] sm:$0xf0]  ;;  %v1476_v48 = vld [vmem:[#allocation8 + $0xd0] sm:$0xf]  ;;  %v1325_v51 = vor.u32 %v1823_v40, %v1324_v39 }
  0x2a   :  { %262 = vmatpush.bf16.msra.mxu1 %v1353_v17  ;;  %v1861_v49 = vld [vmem:[#allocation8 + $0xd4] sm:$0xf0]  ;;  %v1413_v50 = vor.u32 %v1845_v46, %v1412_v45  ;;  %v1316_v52 = vld [vmem:[#allocation5 + $0x10] sm:$0xf]  ;;  %v1404_v54 = vld [vmem:[#allocation8 + $0x40] sm:$0xf]  ;;  %v1329_v56 = vor.u32 %v1822_v44, %v1326_v47 }
  0x2b   :  { %476 = vmatpush.bf16.msra.mxu2 %v1421_v41  ;;  %v1477_v53 = vor.u32 %v1861_v49, %v1476_v48  ;;  %v1843_v55 = vld [vmem:[#allocation8 + $0x44] sm:$0xf0]  ;;  %v1821_v57 = vld [vmem:[#allocation5 + $0x14] sm:$0xf0]  ;;  %v1468_v58 = vld [vmem:[#allocation8 + $0xc0] sm:$0xf] }
  0x2c   :  { %v1859_v59 = vld [vmem:[#allocation8 + $0xc4] sm:$0xf0]  ;;  %v1820_v60 = vld [vmem:[#allocation5 + $0x14] sm:$0xf]  ;;  %v1318_v61 = vld [vmem:[#allocation5 + $0x18] sm:$0xf0]  ;;  %v1405_v62 = vor.u32 %v1843_v55, %v1404_v54  ;;  %v1317_v63 = vor.u32 %v1821_v57, %v1316_v52 }
  0x2d   :  { %250 = vmatpush.bf16.msra.mxu0 %v1341_v22  ;;  %489 = vmatpush.bf16.msra.mxu3 %v1485_v42  ;;  %v1469_v0 = vor.u32 %v1859_v59, %v1468_v58  ;;  %v1321_v1 = vor.u32 %v1820_v60, %v1318_v61  ;;  %v1308_v2 = vld [vmem:[#allocation5] sm:$0xf]  ;;  %v1819_v3 = vld [vmem:[#allocation5 + $0x4] sm:$0xf0]  ;;  %v1818_v4 = vld [vmem:[#allocation5 + $0x4] sm:$0xf] }
  0x2e   :  { %263 = vmatpush.bf16.msra.mxu1 %v1345_v26  ;;  %v1310_v5 = vld [vmem:[#allocation5 + $0x8] sm:$0xf0]  ;;  %v1848_v6 = vld [vmem:[#allocation8 + $0x74] sm:$0xf]  ;;  %v1430_v7 = vld [vmem:[#allocation8 + $0x78] sm:$0xf0]  ;;  %v1309_v10 = vor.u32 %v1819_v3, %v1308_v2 }
  0x2f   :  { %477 = vmatpush.bf16.msra.mxu2 %v1413_v50  ;;  %v1864_v8 = vld [vmem:[#allocation8 + $0xf4] sm:$0xf]  ;;  %v1494_v9 = vld [vmem:[#allocation8 + $0xf8] sm:$0xf0]  ;;  %v1313_v11 = vor.u32 %v1818_v4, %v1310_v5  ;;  %v1433_v12 = vor.u32 %v1848_v6, %v1430_v7  ;;  %v1846_v14 = vld [vmem:[#allocation8 + $0x64] sm:$0xf] }
  0x30   :  { %v1497_v13 = vor.u32 %v1864_v8, %v1494_v9  ;;  %v1422_v15 = vld [vmem:[#allocation8 + $0x68] sm:$0xf0]  ;;  %v1862_v16 = vld [vmem:[#allocation8 + $0xe4] sm:$0xf]  ;;  %v144_v18 = vld [vmem:[#allocation2] sm:$0xf] }
  0x31   :  { %251 = vmatpush.bf16.msra.mxu0 %v1333_v38  ;;  %490 = vmatpush.bf16.msra.mxu3 %v1477_v53  ;;  %v1486_v17 = vld [vmem:[#allocation8 + $0xe8] sm:$0xf0]  ;;  %v1425_v19 = vor.u32 %v1846_v14, %v1422_v15  ;;  %v1844_v21 = vld [vmem:[#allocation8 + $0x54] sm:$0xf]  ;;  %v1414_v22 = vld [vmem:[#allocation8 + $0x58] sm:$0xf0] }
  0x32   :  { %264 = vmatpush.bf16.msra.mxu1 %v1337_v43  ;;  %v1489_v20 = vor.u32 %v1862_v16, %v1486_v17  ;;  %v1860_v23 = vld [vmem:[#allocation8 + $0xd4] sm:$0xf]  ;;  %v1478_v24 = vld [vmem:[#allocation8 + $0xd8] sm:$0xf0]  ;;  %v1417_v25 = vor.u32 %v1844_v21, %v1414_v22  ;;  %v1842_v27 = vld [vmem:[#allocation8 + $0x44] sm:$0xf] }
  0x33   :  { %478 = vmatpush.bf16.msra.mxu2 %v1405_v62  ;;  %v1481_v26 = vor.u32 %v1860_v23, %v1478_v24  ;;  %v1406_v28 = vld [vmem:[#allocation8 + $0x48] sm:$0xf0]  ;;  %v1858_v29 = vld [vmem:[#allocation8 + $0xc4] sm:$0xf]  ;;  %v1396_v33 = vld [vmem:[#allocation8 + $0x30] sm:$0xf] }
  0x34   :  { %v1470_v30 = vld [vmem:[#allocation8 + $0xc8] sm:$0xf0]  ;;  %v1409_v31 = vor.u32 %v1842_v27, %v1406_v28  ;;  %v1841_v34 = vld [vmem:[#allocation8 + $0x34] sm:$0xf0]  ;;  %v1460_v35 = vld [vmem:[#allocation8 + $0xb0] sm:$0xf] }
  0x35   :  { %252 = vmatpush.bf16.msra.mxu0 %v1325_v51  ;;  %491 = vmatpush.bf16.msra.mxu3 %v1469_v0  ;;  %v1473_v32 = vor.u32 %v1858_v29, %v1470_v30  ;;  %v1397_v36 = vor.u32 %v1841_v34, %v1396_v33  ;;  %v1857_v37 = vld [vmem:[#allocation8 + $0xb4] sm:$0xf0]  ;;  %v1840_v38 = vld [vmem:[#allocation8 + $0x34] sm:$0xf]  ;;  %v1398_v39 = vld [vmem:[#allocation8 + $0x38] sm:$0xf0] }
  0x36   :  { %265 = vmatpush.bf16.msra.mxu1 %v1329_v56  ;;  %v1461_v40 = vor.u32 %v1857_v37, %v1460_v35  ;;  %v1401_v41 = vor.u32 %v1840_v38, %v1398_v39  ;;  %v1856_v42 = vld [vmem:[#allocation8 + $0xb4] sm:$0xf]  ;;  %v1462_v43 = vld [vmem:[#allocation8 + $0xb8] sm:$0xf0]  ;;  %v1388_v45 = vld [vmem:[#allocation8 + $0x20] sm:$0xf] }
  0x37   :  { %479 = vmatpush.bf16.msra.mxu2 %v1397_v36  ;;  %v1465_v44 = vor.u32 %v1856_v42, %v1462_v43  ;;  %v1839_v46 = vld [vmem:[#allocation8 + $0x24] sm:$0xf0]  ;;  %v1452_v47 = vld [vmem:[#allocation8 + $0xa0] sm:$0xf]  ;;  %v1838_v50 = vld [vmem:[#allocation8 + $0x24] sm:$0xf] }
  0x38   :  { %v1389_v48 = vor.u32 %v1839_v46, %v1388_v45  ;;  %v1855_v49 = vld [vmem:[#allocation8 + $0xa4] sm:$0xf0]  ;;  %v1390_v51 = vld [vmem:[#allocation8 + $0x28] sm:$0xf0]  ;;  %v1854_v54 = vld [vmem:[#allocation8 + $0xa4] sm:$0xf] }
  0x39   :  { %253 = vmatpush.bf16.msra.mxu0 %v1317_v63  ;;  %492 = vmatpush.bf16.msra.mxu3 %v1461_v40  ;;  %v1453_v52 = vor.u32 %v1855_v49, %v1452_v47  ;;  %v1393_v53 = vor.u32 %v1838_v50, %v1390_v51  ;;  %v1454_v55 = vld [vmem:[#allocation8 + $0xa8] sm:$0xf0]  ;;  %v1380_v57 = vld [vmem:[#allocation8 + $0x10] sm:$0xf]  ;;  %v1837_v58 = vld [vmem:[#allocation8 + $0x14] sm:$0xf0] }
  0x3a   :  { %266 = vmatpush.bf16.msra.mxu1 %v1321_v1  ;;  %v1457_v56 = vor.u32 %v1854_v54, %v1454_v55  ;;  %v1444_v59 = vld [vmem:[#allocation8 + $0x90] sm:$0xf]  ;;  %v1381_v60 = vor.u32 %v1837_v58, %v1380_v57  ;;  %v1853_v61 = vld [vmem:[#allocation8 + $0x94] sm:$0xf0]  ;;  %v1836_v62 = vld [vmem:[#allocation8 + $0x14] sm:$0xf] }
  0x3b   :  { %480 = vmatpush.bf16.msra.mxu2 %v1389_v48  ;;  %v1382_v63 = vld [vmem:[#allocation8 + $0x18] sm:$0xf0]  ;;  %v1445_v0 = vor.u32 %v1853_v61, %v1444_v59  ;;  %v1852_v2 = vld [vmem:[#allocation8 + $0x94] sm:$0xf]  ;;  %v1372_v4 = vld [vmem:[#allocation8] sm:$0xf] }
  0x3c   :  { %v1385_v1 = vor.u32 %v1836_v62, %v1382_v63  ;;  %v1446_v3 = vld [vmem:[#allocation8 + $0x98] sm:$0xf0]  ;;  %v1835_v6 = vld [vmem:[#allocation8 + $0x4] sm:$0xf0]  ;;  %v1436_v7 = vld [vmem:[#allocation8 + $0x80] sm:$0xf] }
  0x3d   :  { %254 = vmatpush.bf16.msra.mxu0 %v1309_v10  ;;  %493 = vmatpush.bf16.msra.mxu3 %v1453_v52  ;;  %v1449_v5 = vor.u32 %v1852_v2, %v1446_v3  ;;  %v1851_v8 = vld [vmem:[#allocation8 + $0x84] sm:$0xf0]  ;;  %v1373_v9 = vor.u32 %v1835_v6, %v1372_v4  ;;  %v1438_v15 = vld [vmem:[#allocation8 + $0x88] sm:$0xf0]  ;;  %v1556_v17 = vld [vmem:[#allocation10 + $0x70] sm:$0xf] }
  0x3e   :  { %267 = vmatpush.bf16.msra.mxu1 %v1313_v11  ;;  %v1437_v10 = vor.u32 %v1851_v8, %v1436_v7  ;;  %v1834_v11 = vld [vmem:[#allocation8 + $0x4] sm:$0xf]  ;;  %v1897_v21 = vld [vmem:[#allocation10 + $0xf4] sm:$0xf0]  ;;  %v1880_v22 = vld [vmem:[#allocation10 + $0x74] sm:$0xf] }
  0x3f   :  { %481 = vmatpush.bf16.msra.mxu2 %v1381_v60  ;;  %v1558_v23 = vld [vmem:[#allocation10 + $0x78] sm:$0xf0]  ;;  %v1548_v28 = vld [vmem:[#allocation10 + $0x60] sm:$0xf]  ;;  %v1879_v30 = vld [vmem:[#allocation10 + $0x64] sm:$0xf0] }
  0x40   :  { %255 = vmatmul.bf16.vlgmr.msra.gmra.mxu0 %v144_v18  ;;  %v1622_v27 = vld [vmem:[#allocation10 + $0xf8] sm:$0xf0]  ;;  %v1549_v33 = vor.u32 %v1879_v30, %v1548_v28  ;;  %v1878_v35 = vld [vmem:[#allocation10 + $0x64] sm:$0xf]  ;;  %v1550_v36 = vld [vmem:[#allocation10 + $0x68] sm:$0xf0] }
  0x41   :  { %501 = vmatpush.bf16.msrb.mxu0 %v1433_v12  ;;  %268 = vmatmul.bf16.vlgmr.msra.gmra.mxu1 %v144_v18  ;;  %v1374_v12 = vld [vmem:[#allocation8 + $0x8] sm:$0xf0]  ;;  %v1881_v18 = vld [vmem:[#allocation10 + $0x74] sm:$0xf0]  ;;  %v1894_v37 = vld [vmem:[#allocation10 + $0xe4] sm:$0xf]  ;;  %v1553_v39 = vor.u32 %v1878_v35, %v1550_v36 }
  0x42   :  { %514 = vmatpush.bf16.msrb.mxu1 %v1497_v13  ;;  %494 = vmatpush.bf16.msra.mxu3 %v1445_v0  ;;  %v1850_v13 = vld [vmem:[#allocation8 + $0x84] sm:$0xf]  ;;  %v1377_v14 = vor.u32 %v1834_v11, %v1374_v12  ;;  %v161_v38 = vld [vmem:[#allocation7] sm:$0x3]  ;;  %v1614_v40 = vld [vmem:[#allocation10 + $0xe8] sm:$0xf0] }
  0x43   :  { %v1441_v16 = vor.u32 %v1850_v13, %v1438_v15  ;;  %482 = vmatpush.bf16.msra.mxu2 %v1373_v9  ;;  %v1877_v42 = vld [vmem:[#allocation10 + $0x54] sm:$0xf0]  ;;  %v1617_v43 = vor.u32 %v1894_v37, %v1614_v40  ;;  %v1876_v46 = vld [vmem:[#allocation10 + $0x54] sm:$0xf]  ;;  %v1542_v48 = vld [vmem:[#allocation10 + $0x58] sm:$0xf0] }
  0x44   :  { %v1893_v45 = vld [vmem:[#allocation10 + $0xd4] sm:$0xf0]  ;;  %v1892_v49 = vld [vmem:[#allocation10 + $0xd4] sm:$0xf]  ;;  %v1606_v50 = vld [vmem:[#allocation10 + $0xd8] sm:$0xf0]  ;;  %v1545_v52 = vor.u32 %v1876_v46, %v1542_v48 }
  0x45   :  { %502 = vmatpush.bf16.msrb.mxu0 %v1425_v19  ;;  %v1620_v19 = vld [vmem:[#allocation10 + $0xf0] sm:$0xf]  ;;  %v163_v54 = vperm.slane %v161_v38, 0  ;;  %v164_v55 = vperm.slane %v161_v38, 1  ;;  %v1532_v8 = vld [vmem:[#allocation10 + $0x40] sm:$0xf] }
  0x46   :  { %515 = vmatpush.bf16.msrb.mxu1 %v1489_v20  ;;  %495 = vmatpush.bf16.msra.mxu3 %v1437_v10  ;;  %v1557_v20 = vor.u32 %v1881_v18, %v1556_v17  ;;  %v1621_v24 = vor.u32 %v1897_v21, %v1620_v19  ;;  %v1875_v9 = vld [vmem:[#allocation10 + $0x44] sm:$0xf0]  ;;  %v1596_v10 = vld [vmem:[#allocation10 + $0xc0] sm:$0xf]  ;;  %v1874_v13 = vld [vmem:[#allocation10 + $0x44] sm:$0xf] }
  0x47   :  { %v1533_v11 = vor.u32 %v1875_v9, %v1532_v8  ;;  %v1891_v12 = vld [vmem:[#allocation10 + $0xc4] sm:$0xf0]  ;;  %v1890_v17 = vld [vmem:[#allocation10 + $0xc4] sm:$0xf]  ;;  %v1598_v18 = vld [vmem:[#allocation10 + $0xc8] sm:$0xf0] }
  0x48   :  { %753 = vmatpush.bf16.msrb.mxu2 %v1557_v20  ;;  %v1597_v15 = vor.u32 %v1891_v12, %v1596_v10  ;;  %v1601_v19 = vor.u32 %v1890_v17, %v1598_v18  ;;  %v1524_v20 = vld [vmem:[#allocation10 + $0x30] sm:$0xf]  ;;  %v1873_v21 = vld [vmem:[#allocation10 + $0x34] sm:$0xf0]  ;;  %v1590_v30 = vld [vmem:[#allocation10 + $0xb8] sm:$0xf0] }
  0x49   :  { %503 = vmatpush.bf16.msrb.mxu0 %v1417_v25  ;;  %v1561_v25 = vor.u32 %v1880_v22, %v1558_v23  ;;  %v1588_v22 = vld [vmem:[#allocation10 + $0xb0] sm:$0xf]  ;;  %v1525_v23 = vor.u32 %v1873_v21, %v1524_v20  ;;  %v1887_v36 = vld [vmem:[#allocation10 + $0xa4] sm:$0xf0]  ;;  %v1870_v37 = vld [vmem:[#allocation10 + $0x24] sm:$0xf] }
  0x4a   :  { %516 = vmatpush.bf16.msrb.mxu1 %v1481_v26  ;;  %v1896_v26 = vld [vmem:[#allocation10 + $0xf4] sm:$0xf]  ;;  %766 = vmatpush.bf16.msrb.mxu3 %v1621_v24  ;;  %v1889_v24 = vld [vmem:[#allocation10 + $0xb4] sm:$0xf0]  ;;  %v1518_v38 = vld [vmem:[#allocation10 + $0x28] sm:$0xf0] }
  0x4b   :  { %v1625_v29 = vor.u32 %v1896_v26, %v1622_v27  ;;  %v1526_v26 = vld [vmem:[#allocation10 + $0x38] sm:$0xf0]  ;;  %v1589_v27 = vor.u32 %v1889_v24, %v1588_v22  ;;  %v1521_v40 = vor.u32 %v1870_v37, %v1518_v38  ;;  %v1572_v46 = vld [vmem:[#allocation10 + $0x90] sm:$0xf]  ;;  %v1885_v48 = vld [vmem:[#allocation10 + $0x94] sm:$0xf0] }
  0x4c   :  { %754 = vmatpush.bf16.msrb.mxu2 %v1549_v33  ;;  %v1871_v33 = vld [vmem:[#allocation10 + $0x24] sm:$0xf0]  ;;  %v1913_v8 = vld [vmem:[#allocation11 + $0x74] sm:$0xf0]  ;;  %v1748_v9 = vld [vmem:[#allocation11 + $0xf0] sm:$0xf] }
  0x4d   :  { %504 = vmatpush.bf16.msrb.mxu0 %v1409_v31  ;;  %v1612_v31 = vld [vmem:[#allocation10 + $0xe0] sm:$0xf]  ;;  %v1929_v12 = vld [vmem:[#allocation11 + $0xf4] sm:$0xf0]  ;;  %v1928_v17 = vld [vmem:[#allocation11 + $0xf4] sm:$0xf] }
  0x4e   :  { %517 = vmatpush.bf16.msrb.mxu1 %v1473_v32  ;;  %v1895_v32 = vld [vmem:[#allocation10 + $0xe4] sm:$0xf0]  ;;  %v1750_v18 = vld [vmem:[#allocation11 + $0xf8] sm:$0xf0]  ;;  %v1740_v22 = vld [vmem:[#allocation11 + $0xe0] sm:$0xf] }
  0x4f   :  { %v1613_v34 = vor.u32 %v1895_v32, %v1612_v31  ;;  %v1516_v32 = vld [vmem:[#allocation10 + $0x20] sm:$0xf]  ;;  %v1753_v20 = vor.u32 %v1928_v17, %v1750_v18  ;;  %v1911_v21 = vld [vmem:[#allocation11 + $0x64] sm:$0xf0]  ;;  %v1925_v37 = vld [vmem:[#allocation11 + $0xd4] sm:$0xf0] }
  0x50   :  { %v1517_v35 = vor.u32 %v1871_v33, %v1516_v32  ;;  %v1742_v32 = vld [vmem:[#allocation11 + $0xe8] sm:$0xf0]  ;;  %v1668_v33 = vld [vmem:[#allocation11 + $0x50] sm:$0xf]  ;;  %v1908_v38 = vld [vmem:[#allocation11 + $0x54] sm:$0xf] }
  0x51   :  { %505 = vmatpush.bf16.msrb.mxu0 %v1401_v41  ;;  %v1540_v41 = vld [vmem:[#allocation10 + $0x50] sm:$0xf]  ;;  %767 = vmatpush.bf16.msrb.mxu3 %v1613_v34  ;;  %v1580_v34 = vld [vmem:[#allocation10 + $0xa0] sm:$0xf]  ;;  %v1922_v18 = vld [vmem:[#allocation11 + $0xc4] sm:$0xf] }
  0x52   :  { %518 = vmatpush.bf16.msrb.mxu1 %v1465_v44  ;;  %v1604_v44 = vld [vmem:[#allocation10 + $0xd0] sm:$0xf]  ;;  %v1541_v47 = vor.u32 %v1877_v42, %v1540_v41  ;;  %v1886_v41 = vld [vmem:[#allocation10 + $0xa4] sm:$0xf]  ;;  %v1582_v42 = vld [vmem:[#allocation10 + $0xa8] sm:$0xf0] }
  0x53   :  { %v1605_v51 = vor.u32 %v1893_v45, %v1604_v44  ;;  %v1508_v44 = vld [vmem:[#allocation10 + $0x10] sm:$0xf]  ;;  %v1869_v45 = vld [vmem:[#allocation10 + $0x14] sm:$0xf0]  ;;  %s2180_s14 = smov [#allocation14]   ;;  %s1293_s7 = sshll.u32 %s2300_s11, 4  ;;  %s1294_s7 = int_to_ptr.hbm [resolvable:$true] %s1293_s7 }
  0x54   :  { %755 = vmatpush.bf16.msrb.mxu2 %v1541_v47  ;;  %v1509_v47 = vor.u32 %v1869_v45, %v1508_v44  ;;  %s1291_s15 = sshll.u32 %s2180_s14, 4  ;;  %s1292_s15 = int_to_ptr.vmem [resolvable:$true] %s1291_s15 }
  0x55   :  { %506 = vmatpush.bf16.msrb.mxu0 %v1393_v53  ;;  %v1609_v53 = vor.u32 %v1892_v49, %v1606_v50  ;;  %768 = vmatpush.bf16.msrb.mxu3 %v1605_v51  ;;  %v1868_v49 = vld [vmem:[#allocation10 + $0x14] sm:$0xf]  ;;  %v1510_v50 = vld [vmem:[#allocation10 + $0x18] sm:$0xf0]  ;;  %v1573_v51 = vor.u32 %v1885_v48, %v1572_v46 }
  0x56   :  { %519 = vmatpush.bf16.msrb.mxu1 %v1457_v56 }
  0x58   :  { %756 = vmatpush.bf16.msrb.mxu2 %v1533_v11 }
  0x59   :  { %507 = vmatpush.bf16.msrb.mxu0 %v1385_v1  ;;  %769 = vmatpush.bf16.msrb.mxu3 %v1597_v15  ;;  %v1749_v15 = vor.u32 %v1929_v12, %v1748_v9  ;;  %v1660_v9 = vld [vmem:[#allocation11 + $0x40] sm:$0xf] }
  0x5a   :  { %520 = vmatpush.bf16.msrb.mxu1 %v1449_v5 }
  0x5c   :  { %757 = vmatpush.bf16.msrb.mxu2 %v1525_v23  ;;  %v1927_v23 = vld [vmem:[#allocation11 + $0xe4] sm:$0xf0] }
  0x5d   :  { %508 = vmatpush.bf16.msrb.mxu0 %v1377_v14  ;;  %v1534_v14 = vld [vmem:[#allocation10 + $0x48] sm:$0xf0]  ;;  %770 = vmatpush.bf16.msrb.mxu3 %v1589_v27 }
  0x5e   :  { %521 = vmatpush.bf16.msrb.mxu1 %v1441_v16  ;;  %v1537_v16 = vor.u32 %v1874_v13, %v1534_v14  ;;  %v1912_v13 = vld [vmem:[#allocation11 + $0x74] sm:$0xf]  ;;  %v1686_v14 = vld [vmem:[#allocation11 + $0x78] sm:$0xf0]  ;;  %v1678_v27 = vld [vmem:[#allocation11 + $0x68] sm:$0xf0] }
  0x60   :  { %758 = vmatpush.bf16.msrb.mxu2 %v1517_v35 }
  0x61   :  { %779 = vmatpush.bf16.msra.mxu0 %v1561_v25  ;;  %v1872_v25 = vld [vmem:[#allocation10 + $0x34] sm:$0xf] }
  0x62   :  { %792 = vmatpush.bf16.msra.mxu1 %v1625_v29  ;;  %v1529_v28 = vor.u32 %v1872_v25, %v1526_v26  ;;  %v1888_v29 = vld [vmem:[#allocation10 + $0xb4] sm:$0xf]  ;;  %v1741_v25 = vor.u32 %v1927_v23, %v1740_v22  ;;  %v1910_v26 = vld [vmem:[#allocation11 + $0x64] sm:$0xf]  ;;  %v1905_v22 = vld [vmem:[#allocation11 + $0x34] sm:$0xf0] }
  0x63   :  { %v1593_v31 = vor.u32 %v1888_v29, %v1590_v30  ;;  %v1716_v23 = vld [vmem:[#allocation11 + $0xb0] sm:$0xf] }
  0x64   :  { %759 = vmatpush.bf16.msrb.mxu2 %v1509_v47 }
  0x65   :  { %780 = vmatpush.bf16.msra.mxu0 %v1553_v39  ;;  %v1581_v39 = vor.u32 %v1887_v36, %v1580_v34  ;;  %v1909_v34 = vld [vmem:[#allocation11 + $0x54] sm:$0xf0]  ;;  %v1732_v36 = vld [vmem:[#allocation11 + $0xd0] sm:$0xf] }
  0x66   :  { %793 = vmatpush.bf16.msra.mxu1 %v1617_v43  ;;  %v1585_v43 = vor.u32 %v1886_v41, %v1582_v42  ;;  %v1924_v41 = vld [vmem:[#allocation11 + $0xd4] sm:$0xf]  ;;  %v1734_v42 = vld [vmem:[#allocation11 + $0xd8] sm:$0xf0] }
  0x67   :  { %771 = vmatpush.bf16.msrb.mxu3 %v1581_v39  ;;  %v1669_v39 = vor.u32 %v1909_v34, %v1668_v33  ;;  %v1737_v47 = vor.u32 %v1924_v41, %v1734_v42  ;;  %v1644_v33 = vld [vmem:[#allocation11 + $0x20] sm:$0xf]  ;;  %v1903_v34 = vld [vmem:[#allocation11 + $0x24] sm:$0xf0]  ;;  %v1918_v42 = vld [vmem:[#allocation11 + $0xa4] sm:$0xf] }
  0x69   :  { %781 = vmatpush.bf16.msra.mxu0 %v1545_v52  ;;  %v1513_v52 = vor.u32 %v1868_v49, %v1510_v50 }
  0x6a   :  { %794 = vmatpush.bf16.msra.mxu1 %v1609_v53  ;;  %v1884_v53 = vld [vmem:[#allocation10 + $0x94] sm:$0xf] }
  0x6b   :  { %772 = vmatpush.bf16.msrb.mxu3 %v1573_v51 }
  0x6d   :  { %782 = vmatpush.bf16.msra.mxu0 %v1537_v16  ;;  %v1689_v16 = vor.u32 %v1912_v13, %v1686_v14  ;;  %v1923_v13 = vld [vmem:[#allocation11 + $0xc4] sm:$0xf0]  ;;  %v1906_v14 = vld [vmem:[#allocation11 + $0x44] sm:$0xf] }
  0x6e   :  { %795 = vmatpush.bf16.msra.mxu1 %v1601_v19  ;;  %v1676_v19 = vld [vmem:[#allocation11 + $0x60] sm:$0xf] }
  0x6f   :  { %v1677_v24 = vor.u32 %v1911_v21, %v1676_v19  ;;  %v1726_v19 = vld [vmem:[#allocation11 + $0xc8] sm:$0xf0]  ;;  %v1652_v21 = vld [vmem:[#allocation11 + $0x30] sm:$0xf] }
  0x71   :  { %783 = vmatpush.bf16.msra.mxu0 %v1529_v28  ;;  %v1926_v28 = vld [vmem:[#allocation11 + $0xe4] sm:$0xf] }
  0x72   :  { %796 = vmatpush.bf16.msra.mxu1 %v1593_v31  ;;  %v1681_v31 = vor.u32 %v1910_v26, %v1678_v27  ;;  %v1745_v35 = vor.u32 %v1926_v28, %v1742_v32  ;;  %v1904_v26 = vld [vmem:[#allocation11 + $0x34] sm:$0xf]  ;;  %v1654_v27 = vld [vmem:[#allocation11 + $0x38] sm:$0xf0] }
  0x75   :  { %784 = vmatpush.bf16.msra.mxu0 %v1521_v40  ;;  %v1670_v40 = vld [vmem:[#allocation11 + $0x58] sm:$0xf0] }
  0x76   :  { %797 = vmatpush.bf16.msra.mxu1 %v1585_v43  ;;  %v1733_v43 = vor.u32 %v1925_v37, %v1732_v36  ;;  %v1673_v44 = vor.u32 %v1908_v38, %v1670_v40  ;;  %v1645_v36 = vor.u32 %v1903_v34, %v1644_v33  ;;  %v1919_v37 = vld [vmem:[#allocation11 + $0xa4] sm:$0xf0]  ;;  %v1902_v38 = vld [vmem:[#allocation11 + $0x24] sm:$0xf] }
  0x79   :  { %785 = vmatpush.bf16.msra.mxu0 %v1513_v52 }
  0xbd   :  { %v256_v56 = vpop.f32.mrf.mxu0 }
  0xbe   :  { %v257_v57 = vadd.f32 %v256_v56, %v163_v54  ;;  %v269_v58 = vpop.f32.mrf.mxu1  ;;  %v1574_v54 = vld [vmem:[#allocation10 + $0x98] sm:$0xf0]  ;;  %v528_v56 = vld [vmem:[%s2293_s4] sm:$0x3] }
  0xbf   :  { %v270_v59 = vadd.f32 %v269_v58, %v164_v55  ;;  %v1577_v55 = vor.u32 %v1884_v53, %v1574_v54  ;;  %v1867_v58 = vld [vmem:[#allocation10 + $0x4] sm:$0xf0] }
  0xc0   :  { %v273_v60 = vmul.f32 0.5, %v257_v57  ;;  %v1500_v57 = vld [vmem:[#allocation10] sm:$0xf] }
  0xc1   :  { %v274_v61 = vmul.f32 0.5, %v270_v59  ;;  %v1564_v59 = vld [vmem:[#allocation10 + $0x80] sm:$0xf]  ;;  %798 = vmatpush.bf16.msra.mxu1 %v1577_v55 }
  0xc2   :  { %1959 = vtanh.f32 %v273_v60  ;;  %v1501_v60 = vor.u32 %v1867_v58, %v1500_v57 }
  0xc3   :  { %1961 = vtanh.f32 %v274_v61  ;;  %v1883_v61 = vld [vmem:[#allocation10 + $0x84] sm:$0xf0] }
  0xc4   :  { %760 = vmatpush.bf16.msrb.mxu2 %v1501_v60 }
  0xc5   :  { %v258_v62 = vpop.f32.mrf.mxu0 }
  0xc6   :  { %v271_v63 = vpop.f32.mrf.mxu1  ;;  %v1866_v62 = vld [vmem:[#allocation10 + $0x4] sm:$0xf] }
  0xc7   :  { %v1502_v63 = vld [vmem:[#allocation10 + $0x8] sm:$0xf0] }
  0xc8   :  { %v1960_v0 = vpop.eup %1959 }
  0xc9   :  { %v1962_v1 = vpop.eup %1961  ;;  %v277_v2 = vmul.f32 0.5, %v1960_v0  ;;  %v1565_v0 = vor.u32 %v1883_v61, %v1564_v59 }
  0xca   :  { %v278_v3 = vmul.f32 0.5, %v1962_v1  ;;  %v1505_v1 = vor.u32 %v1866_v62, %v1502_v63 }
  0xcb   :  { %v279_v4 = vadd.f32 0.5, %v277_v2  ;;  %v1882_v2 = vld [vmem:[#allocation10 + $0x84] sm:$0xf]  ;;  %773 = vmatpush.bf16.msrb.mxu3 %v1565_v0 }
  0xcc   :  { %v280_v5 = vadd.f32 0.5, %v278_v3  ;;  %v1566_v3 = vld [vmem:[#allocation10 + $0x88] sm:$0xf0]  ;;  %786 = vmatpush.bf16.msra.mxu0 %v1505_v1 }
  0xcd   :  { %v281_v6 = vpack.c.bf16 %v279_v4, %v279_v4  ;;  %v1569_v4 = vor.u32 %v1882_v2, %v1566_v3 }
  0xce   :  { %v282_v7 = vpack.c.bf16 %v280_v5, %v280_v5  ;;  %v530_v5 = vperm.slane %v528_v56, 0 }
  0xcf   :  { %483 = vmatmul.bf16.vlgmr.msra.gmra.mxu2 %v281_v6  ;;  %509 = vmatmul.bf16.vlgmr.msrb.gmra.mxu0 %v281_v6  ;;  %v531_v6 = vperm.slane %v528_v56, 1 }
  0xd0   :  { %496 = vmatmul.bf16.vlgmr.msra.gmra.mxu3 %v282_v7  ;;  %522 = vmatmul.bf16.vlgmr.msrb.gmra.mxu1 %v282_v7  ;;  %v1684_v7 = vld [vmem:[#allocation11 + $0x70] sm:$0xf] }
  0xd1   :  { %799 = vmatpush.bf16.msra.mxu1 %v1569_v4  ;;  %v534_v10 = vpack.c.bf16 %v531_v6, %v530_v5  ;;  %v1685_v11 = vor.u32 %v1913_v8, %v1684_v7  ;;  %1044 = vmatpush.bf16.msra.mxu3 %v1749_v15  ;;  %v1662_v15 = vld [vmem:[#allocation11 + $0x48] sm:$0xf0] }
  0xd2   :  { %1057 = vmatpush.bf16.msrb.mxu0 %v1689_v16  ;;  %v1665_v17 = vor.u32 %v1906_v14, %v1662_v15  ;;  %v1935_v15 = vld [vmem:[#allocation13 + $0x28] sm:$0xff] }
  0xd3   :  { %1031 = vmatpush.bf16.msra.mxu2 %v1685_v11  ;;  %v536_v29 = vunpack.c.l.b16 %v534_v10  ;;  %v537_v30 = vunpack.c.h.b16 %v534_v10  ;;  %v1907_v10 = vld [vmem:[#allocation11 + $0x44] sm:$0xf0]  ;;  %v1724_v11 = vld [vmem:[#allocation11 + $0xc0] sm:$0xf] }
  0xd4   :  { %v1661_v12 = vor.u32 %v1907_v10, %v1660_v9  ;;  %v1725_v16 = vor.u32 %v1923_v13, %v1724_v11  ;;  %v1945_v9 = vld [vmem:[#allocation13 + $0x78] sm:$0xff]  ;;  %v1936_v11 = vld [vmem:[#allocation13 + $0x30] sm:$0xff] }
  0xd5   :  { %1070 = vmatpush.bf16.msrb.mxu1 %v1753_v20  ;;  %1045 = vmatpush.bf16.msra.mxu3 %v1741_v25  ;;  %v538_v45 = vpack.c.b16 %v536_v29, %v536_v29  ;;  %v539_v46 = vpack.c.b16 %v537_v30, %v537_v30  ;;  %v1729_v20 = vor.u32 %v1922_v18, %v1726_v19  ;;  %v1921_v25 = vld [vmem:[#allocation11 + $0xb4] sm:$0xf0]  ;;  %v1920_v30 = vld [vmem:[#allocation11 + $0xb4] sm:$0xf] }
  0xd6   :  { %1058 = vmatpush.bf16.msrb.mxu0 %v1681_v31  ;;  %v1717_v28 = vor.u32 %v1921_v25, %v1716_v23  ;;  %v1657_v29 = vor.u32 %v1904_v26, %v1654_v27  ;;  %v1718_v31 = vld [vmem:[#allocation11 + $0xb8] sm:$0xf0] }
  0xd7   :  { %1032 = vmatpush.bf16.msra.mxu2 %v1677_v24  ;;  %v541_v50 = vpack.i.b16 %v538_v45, %v538_v45  ;;  %v545_v51 = vpack.i.b16 %v539_v46, %v539_v46  ;;  %v1653_v24 = vor.u32 %v1905_v22, %v1652_v21  ;;  %v1721_v32 = vor.u32 %v1920_v30, %v1718_v31  ;;  %v1636_v45 = vld [vmem:[#allocation11 + $0x10] sm:$0xf]  ;;  %v1901_v46 = vld [vmem:[#allocation11 + $0x14] sm:$0xf0] }
  0xd9   :  { %1071 = vmatpush.bf16.msrb.mxu1 %v1745_v35  ;;  %1046 = vmatpush.bf16.msra.mxu3 %v1733_v43  ;;  %v543_v53 = vperm.slane %v541_v50, 0  ;;  %v547_v54 = vperm.slane %v545_v51, 0  ;;  %v1708_v35 = vld [vmem:[#allocation11 + $0xa0] sm:$0xf]  ;;  %v1710_v43 = vld [vmem:[#allocation11 + $0xa8] sm:$0xf0] }
  0xda   :  { %1059 = vmatpush.bf16.msrb.mxu0 %v1673_v44  ;;  %v1709_v40 = vor.u32 %v1919_v37, %v1708_v35  ;;  %v1713_v44 = vor.u32 %v1918_v42, %v1710_v43  ;;  %v1900_v50 = vld [vmem:[#allocation11 + $0x14] sm:$0xf] }
  0xdb   :  { %1033 = vmatpush.bf16.msra.mxu2 %v1669_v39  ;;  %v550_v61 = vunpack.c.l.bf16 %v543_v53  ;;  %v551_v62 = vunpack.c.l.bf16 %v547_v54  ;;  %v1646_v39 = vld [vmem:[#allocation11 + $0x28] sm:$0xf0]  ;;  %v1916_v53 = vld [vmem:[#allocation11 + $0x94] sm:$0xf]  ;;  %v1702_v54 = vld [vmem:[#allocation11 + $0x98] sm:$0xf0] }
  0xdc   :  { %v1649_v41 = vor.u32 %v1902_v38, %v1646_v39 }
  0xdd   :  { %1072 = vmatpush.bf16.msrb.mxu1 %v1737_v47  ;;  %1047 = vmatpush.bf16.msra.mxu3 %v1725_v16  ;;  %v1700_v47 = vld [vmem:[#allocation11 + $0x90] sm:$0xf]  ;;  %v1943_v16 = vld [vmem:[#allocation13 + $0x68] sm:$0xff] }
  0xde   :  { %1060 = vmatpush.bf16.msrb.mxu0 %v1665_v17 }
  0xdf   :  { %1034 = vmatpush.bf16.msra.mxu2 %v1661_v12  ;;  %v1944_v12 = vld [vmem:[#allocation13 + $0x70] sm:$0xff] }
  0xe1   :  { %1073 = vmatpush.bf16.msrb.mxu1 %v1729_v20  ;;  %1048 = vmatpush.bf16.msra.mxu3 %v1717_v28 }
  0xe2   :  { %1061 = vmatpush.bf16.msrb.mxu0 %v1657_v29 }
  0xe3   :  { %1035 = vmatpush.bf16.msra.mxu2 %v1653_v24 }
  0xe5   :  { %1074 = vmatpush.bf16.msrb.mxu1 %v1721_v32  ;;  %1049 = vmatpush.bf16.msra.mxu3 %v1709_v40 }
  0xe6   :  { %1062 = vmatpush.bf16.msrb.mxu0 %v1649_v41 }
  0xe7   :  { %1036 = vmatpush.bf16.msra.mxu2 %v1645_v36 }
  0xe9   :  { %1075 = vmatpush.bf16.msrb.mxu1 %v1713_v44  ;;  %v1934_v44 = vld [vmem:[#allocation13 + $0x20] sm:$0xff] }
 0x14c   :  { %v510_v48 = vpop.f32.mrf.mxu0 }
 0x14d   :  { %v523_v49 = vpop.f32.mrf.mxu1 }
 0x14e   :  { %v524_v56 = vadd.f32 %v523_v49, %v510_v48  ;;  %v1637_v48 = vor.u32 %v1901_v46, %v1636_v45  ;;  %v1917_v49 = vld [vmem:[#allocation11 + $0x94] sm:$0xf0]  ;;  %v1942_v45 = vld [vmem:[#allocation13 + $0x60] sm:$0xff] }
 0x14f   :  { %v1701_v51 = vor.u32 %v1917_v49, %v1700_v47  ;;  %v1933_v46 = vld [vmem:[#allocation13 + $0x18] sm:$0xff]  ;;  %v1940_v49 = vld [vmem:[#allocation13 + $0x50] sm:$0xff] }
 0x150   :  { %1037 = vmatpush.bf16.msra.mxu2 %v1637_v48  ;;  %v1941_v47 = vld [vmem:[#allocation13 + $0x58] sm:$0xff]  ;;  %v1932_v48 = vld [vmem:[#allocation13 + $0x10] sm:$0xff] }
 0x151   :  { %1050 = vmatpush.bf16.msra.mxu3 %v1701_v51  ;;  %v1939_v51 = vld [vmem:[#allocation13 + $0x48] sm:$0xff] }
 0x152   :  { %v484_v52 = vpop.f32.mrf.mxu2 }
 0x153   :  { %v497_v55 = vpop.f32.mrf.mxu3 }
 0x154   :  { %v498_v57 = vadd.f32 %v497_v55, %v484_v52  ;;  %v512_v58 = vpop.f32.mrf.mxu0  ;;  %v1638_v52 = vld [vmem:[#allocation11 + $0x18] sm:$0xf0]  ;;  %v806_v55 = vld [vmem:[%s2295_s6] sm:$0x3] }
 0x155   :  { %v525_v59 = vpop.f32.mrf.mxu1  ;;  %v1628_v58 = vld [vmem:[#allocation11] sm:$0xf] }
 0x156   :  { %v527_v60 = vpack.c.bf16 %v524_v56, %v498_v57  ;;  %v1641_v56 = vor.u32 %v1900_v50, %v1638_v52  ;;  %v1705_v57 = vor.u32 %v1916_v53, %v1702_v54  ;;  %v1899_v59 = vld [vmem:[#allocation11 + $0x4] sm:$0xf0]  ;;  %v1084_v52 = vld [vmem:[%s2297_s8] sm:$0x3]  ;;  %v1930_v53 = vld [vmem:[#allocation13] sm:$0xff] }
 0x157   :  { %v1931_v50 = vld [vmem:[#allocation13 + $0x8] sm:$0xff]  ;;  %v1938_v54 = vld [vmem:[#allocation13 + $0x40] sm:$0xff] }
 0x158   :  { %v548_v63 = vunpack.c.l.bf16 %v527_v60  ;;  %v549_v0 = vunpack.c.h.bf16 %v527_v60  ;;  %v1692_v60 = vld [vmem:[#allocation11 + $0x80] sm:$0xf]  ;;  %1063 = vmatpush.bf16.msrb.mxu0 %v1641_v56  ;;  %1076 = vmatpush.bf16.msrb.mxu1 %v1705_v57  ;;  %v1087_v56 = vperm.slane %v1084_v52, 1 }
 0x15a   :  { %v486_v1 = vpop.f32.mrf.mxu2  ;;  %v552_v2 = vadd.f32 %v550_v61, %v548_v63  ;;  %v553_v3 = vadd.f32 %v551_v62, %v549_v0  ;;  %v1629_v61 = vor.u32 %v1899_v59, %v1628_v58  ;;  %v1915_v62 = vld [vmem:[#allocation11 + $0x84] sm:$0xf0]  ;;  %v1898_v63 = vld [vmem:[#allocation11 + $0x4] sm:$0xf]  ;;  %v1630_v0 = vld [vmem:[#allocation11 + $0x8] sm:$0xf0] }
 0x15b   :  { %v499_v4 = vpop.f32.mrf.mxu3  ;;  %v1693_v1 = vor.u32 %v1915_v62, %v1692_v60 }
 0x15c   :  { %v557_v5 = vmax.f32 %v552_v2, 0.0  ;;  %v558_v6 = vmax.f32 %v553_v3, 0.0  ;;  %v1633_v2 = vor.u32 %v1898_v63, %v1630_v0  ;;  %v1914_v3 = vld [vmem:[#allocation11 + $0x84] sm:$0xf]  ;;  %v1694_v4 = vld [vmem:[#allocation11 + $0x88] sm:$0xf0]  ;;  %1038 = vmatpush.bf16.msra.mxu2 %v1629_v61 }
 0x15d   :  { %1051 = vmatpush.bf16.msra.mxu3 %v1693_v1 }
 0x15e   :  { %v559_v7 = vpack.c.bf16 %v557_v5, %v557_v5  ;;  %v560_v8 = vpack.c.bf16 %v558_v6, %v558_v6  ;;  %v808_v5 = vperm.slane %v806_v55, 0  ;;  %v809_v6 = vperm.slane %v806_v55, 1  ;;  %1064 = vmatpush.bf16.msrb.mxu0 %v1633_v2 }
 0x15f   :  { %v1086_v55 = vperm.slane %v1084_v52, 0 }
 0x160   :  { %761 = vmatmul.bf16.vlgmr.msrb.gmra.mxu2 %v559_v7  ;;  %774 = vmatmul.bf16.vlgmr.msrb.gmra.mxu3 %v560_v8  ;;  %v812_v10 = vpack.c.bf16 %v809_v6, %v808_v5 }
 0x161   :  { %787 = vmatmul.bf16.vlgmr.msra.gmra.mxu0 %v559_v7  ;;  %800 = vmatmul.bf16.vlgmr.msra.gmra.mxu1 %v560_v8  ;;  %v1697_v7 = vor.u32 %v1914_v3, %v1694_v4  ;;  %v1937_v8 = vld [vmem:[#allocation13 + $0x38] sm:$0xff]  ;;  %v1090_v57 = vpack.c.bf16 %v1087_v56, %v1086_v55 }
 0x162   :  { %1249 = vmatpush.bf16.msrb.mxu2 %v1937_v8  ;;  %1262 = vmatpush.bf16.msrb.mxu3 %v1945_v9  ;;  %v814_v13 = vunpack.c.l.b16 %v812_v10  ;;  %v815_v14 = vunpack.c.h.b16 %v812_v10 }
 0x163   :  { %1077 = vmatpush.bf16.msrb.mxu1 %v1697_v7  ;;  %v1092_v58 = vunpack.c.l.b16 %v1090_v57  ;;  %v1093_v59 = vunpack.c.h.b16 %v1090_v57 }
 0x164   :  { %v816_v17 = vpack.c.b16 %v814_v13, %v814_v13  ;;  %v817_v18 = vpack.c.b16 %v815_v14, %v815_v14 }
 0x165   :  { %v1094_v60 = vpack.c.b16 %v1092_v58, %v1092_v58  ;;  %v1095_v61 = vpack.c.b16 %v1093_v59, %v1093_v59 }
 0x166   :  { %1250 = vmatpush.bf16.msrb.mxu2 %v1936_v11  ;;  %1263 = vmatpush.bf16.msrb.mxu3 %v1944_v12  ;;  %v819_v21 = vpack.i.b16 %v816_v17, %v816_v17  ;;  %v823_v22 = vpack.i.b16 %v817_v18, %v817_v18 }
 0x167   :  { %v1097_v0 = vpack.i.b16 %v1094_v60, %v1094_v60  ;;  %v1101_v1 = vpack.i.b16 %v1095_v61, %v1095_v61 }
 0x168   :  { %v821_v23 = vperm.slane %v819_v21, 0  ;;  %v825_v24 = vperm.slane %v823_v22, 0 }
 0x169   :  { %v1099_v2 = vperm.slane %v1097_v0, 0  ;;  %v1103_v3 = vperm.slane %v1101_v1, 0 }
 0x16a   :  { %1251 = vmatpush.bf16.msrb.mxu2 %v1935_v15  ;;  %1264 = vmatpush.bf16.msrb.mxu3 %v1943_v16  ;;  %v828_v30 = vunpack.c.l.bf16 %v821_v23  ;;  %v829_v31 = vunpack.c.l.bf16 %v825_v24  ;;  %v1958_v23 = vld [vmem:[%s2299_s10] ss:$0 sm:$0xff] }
 0x16b   :  { %v1106_v9 = vunpack.c.l.bf16 %v1099_v2  ;;  %v1107_v10 = vunpack.c.l.bf16 %v1103_v3 }
 0x16e   :  { %1252 = vmatpush.bf16.msrb.mxu2 %v1934_v44  ;;  %1265 = vmatpush.bf16.msrb.mxu3 %v1942_v45 }
 0x172   :  { %1253 = vmatpush.bf16.msrb.mxu2 %v1933_v46  ;;  %1266 = vmatpush.bf16.msrb.mxu3 %v1941_v47 }
 0x176   :  { %1254 = vmatpush.bf16.msrb.mxu2 %v1932_v48  ;;  %1267 = vmatpush.bf16.msrb.mxu3 %v1940_v49 }
 0x17a   :  { %1255 = vmatpush.bf16.msrb.mxu2 %v1931_v50  ;;  %1268 = vmatpush.bf16.msrb.mxu3 %v1939_v51 }
 0x17e   :  { %1256 = vmatpush.bf16.msrb.mxu2 %v1930_v53  ;;  %1269 = vmatpush.bf16.msrb.mxu3 %v1938_v54 }
 0x1de   :  { %v788_v19 = vpop.f32.mrf.mxu0  ;;  %v801_v20 = vpop.f32.mrf.mxu1 }
 0x1df   :  { %v802_v27 = vadd.f32 %v801_v20, %v788_v19 }
 0x1e3   :  { %v762_v25 = vpop.f32.mrf.mxu2  ;;  %v775_v26 = vpop.f32.mrf.mxu3 }
 0x1e4   :  { %v776_v28 = vadd.f32 %v775_v26, %v762_v25 }
 0x1e6   :  { %v805_v29 = vpack.c.bf16 %v802_v27, %v776_v28  ;;  %v790_v32 = vpop.f32.mrf.mxu0  ;;  %v803_v33 = vpop.f32.mrf.mxu1 }
 0x1e8   :  { %v826_v34 = vunpack.c.l.bf16 %v805_v29  ;;  %v827_v35 = vunpack.c.h.bf16 %v805_v29 }
 0x1ea   :  { %v830_v36 = vadd.f32 %v828_v30, %v826_v34  ;;  %v831_v37 = vadd.f32 %v829_v31, %v827_v35 }
 0x1eb   :  { %v764_v38 = vpop.f32.mrf.mxu2  ;;  %v777_v39 = vpop.f32.mrf.mxu3 }
 0x1ec   :  { %v835_v40 = vmax.f32 %v830_v36, 0.0  ;;  %v836_v41 = vmax.f32 %v831_v37, 0.0 }
 0x1ee   :  { %v837_v42 = vpack.c.bf16 %v835_v40, %v835_v40  ;;  %v838_v43 = vpack.c.bf16 %v836_v41, %v836_v41 }
 0x1f0   :  { %1039 = vmatmul.bf16.vlgmr.msra.gmra.mxu2 %v837_v42  ;;  %1052 = vmatmul.bf16.vlgmr.msra.gmra.mxu3 %v838_v43 }
 0x1f1   :  { %1065 = vmatmul.bf16.vlgmr.msrb.gmra.mxu0 %v837_v42  ;;  %1078 = vmatmul.bf16.vlgmr.msrb.gmra.mxu1 %v838_v43 }
 0x26e   :  { %v1066_v62 = vpop.f32.mrf.mxu0  ;;  %v1079_v63 = vpop.f32.mrf.mxu1 }
 0x26f   :  { %v1080_v6 = vadd.f32 %v1079_v63, %v1066_v62 }
 0x273   :  { %v1040_v4 = vpop.f32.mrf.mxu2  ;;  %v1053_v5 = vpop.f32.mrf.mxu3 }
 0x274   :  { %v1054_v7 = vadd.f32 %v1053_v5, %v1040_v4 }
 0x276   :  { %v1083_v8 = vpack.c.bf16 %v1080_v6, %v1054_v7  ;;  %v1068_v11 = vpop.f32.mrf.mxu0  ;;  %v1081_v12 = vpop.f32.mrf.mxu1 }
 0x278   :  { %v1104_v13 = vunpack.c.l.bf16 %v1083_v8  ;;  %v1105_v14 = vunpack.c.h.bf16 %v1083_v8 }
 0x27a   :  { %v1108_v15 = vadd.f32 %v1106_v9, %v1104_v13  ;;  %v1109_v16 = vadd.f32 %v1107_v10, %v1105_v14 }
 0x27b   :  { %v1042_v17 = vpop.f32.mrf.mxu2  ;;  %v1055_v18 = vpop.f32.mrf.mxu3 }
 0x27c   :  { %v1113_v19 = vmax.f32 %v1108_v15, 0.0  ;;  %v1114_v20 = vmax.f32 %v1109_v16, 0.0 }
 0x27e   :  { %v1115_v21 = vpack.c.bf16 %v1113_v19, %v1113_v19  ;;  %v1116_v22 = vpack.c.bf16 %v1114_v20, %v1114_v20 }
 0x280   :  { %1257 = vmatmul.bf16.vlgmr.msrb.gmra.mxu2 %v1115_v21  ;;  %1270 = vmatmul.bf16.vlgmr.msrb.gmra.mxu3 %v1116_v22 }
 0x303   :  { %v1258_v24 = vpop.f32.mrf.mxu2  ;;  %v1271_v25 = vpop.f32.mrf.mxu3 }
 0x304   :  { %v1259_v26 = vadd.f32 %v1958_v23, %v1258_v24 }
 0x306   :  { %v1272_v27 = vadd.f32 %v1271_v25, %v1259_v26 }
 0x308   :  { %1275 = vmax.xlane.f32.xlu0 %v1272_v27 }
 0x30b   :  { %v1260_v28 = vpop.f32.mrf.mxu2  ;;  %v1273_v29 = vpop.f32.mrf.mxu3 }
 0x37b   :  { %v1276_v30 = vpop.xlane.xlu0 %1275 }
 0x37c   :  { %v1277_v31 = vsub.f32 %v1272_v27, %v1276_v30 }
 0x37e   :  { %v1278_v32 = vmul.f32 1.442695, %v1277_v31 }
 0x380   :  { %1963 = vpow2.f32 %v1278_v32 }
 0x386   :  { %v1964_v33 = vpop.eup %1963 }
 0x387   :  { %1280 = vadd.xlane.f32.xlu0 %v1964_v33 }
 0x3fa   :  { %v1281_v34 = vpop.xlane.xlu0 %1280 }
 0x3fb   :  { %1965 = vrcp.f32 %v1281_v34 }
 0x401   :  { %v1966_v35 = vpop.eup %1965 }
 0x402   :  { %v1283_v36 = vmul.f32 %v1966_v35, %v1964_v33 }
 0x404   :  { %v1284_v37 = vpack.c.bf16 %v1283_v36, %v1283_v36 }
 0x406   :  { %1285 = vst [vmem:[#allocation14] sm:$0xf] %v1284_v37 }
 0x407   :  { %1296 = dma.vmem_to_hbm [thread:$0]  %s1292_s15, 64, %s1294_s7, [#allocation4]  }
 0x408   :  { %2167 = dma.done.wait [#allocation4], 64  }
 0x409   :  { %2168 = vsyncadd [#allocation4], 4294967232 }
 0x40a   :  { %1301 = vsyncpa [#allocation3], 1 }
 0x40b   :  { %1302 = vsyncpa [#allocation6], 1 }
 0x40c   :  { %1303 = vsyncpa [#allocation9], 1 }
 0x40d   :  { %1304 = vsyncpa [#allocation12], 1 }
 0x40e   :  { %1305 = vsyncpa [#allocation4], 1 }

// kernel: tpu_custom_call.1
= control target key start
LH: loop header
LB: loop body
LE: loop exit
PB: predicated region body
PF: predicated region fallthrough
CT: control target
= control target key end

     0   :  { %16 = vsyncpa [#allocation3], 0  ;;  %s2289_s0 = inlined_call_operand.hbm [shape: bf16[8,128], index: 0, kind: input, shape index: {}]   ;;  %s2290_s1 = inlined_call_operand.hbm [shape: bf16[128,256], index: 1, kind: input, shape index: {}]   ;;  %s2291_s2 = inlined_call_operand.hbm [shape: f32[1,256], index: 2, kind: input, shape index: {}]   ;;  %s2292_s3 = inlined_call_operand.hbm [shape: bf16[256,256], index: 3, kind: input, shape index: {}]   ;;  %s2293_s4 = inlined_call_operand.vmem [shape: f32[1,256], index: 4, kind: input, shape index: {}]   ;;  %s2294_s5 = inlined_call_operand.hbm [shape: bf16[256,256], index: 5, kind: input, shape index: {}]   ;;  %s2295_s6 = inlined_call_operand.vmem [shape: f32[1,256], index: 6, kind: input, shape index: {}]   ;;  %s2296_s7 = inlined_call_operand.hbm [shape: bf16[256,256], index: 7, kind: input, shape index: {}]   ;;  %s2297_s8 = inlined_call_operand.vmem [shape: f32[1,256], index: 8, kind: input, shape index: {}]   ;;  %s2298_s9 = inlined_call_operand.hbm [shape: bf16[256,128], index: 9, kind: input, shape index: {}]   ;;  %s2299_s10 = inlined_call_operand.vmem [shape: f32[1,128], index: 10, kind: input, shape index: {}]   ;;  %s2300_s11 = inlined_call_operand.hbm [shape: bf16[8,128], index: 11, kind: output, shape index: {}]  }
   0x1   :  { %17 = vsyncpa [#allocation6], 0 }
   0x2   :  { %18 = vsyncpa [#allocation9], 0 }
   0x3   :  { %19 = vsyncpa [#allocation12], 0  ;;  %s36_s19 = sshll.u32 %s2290_s1, 4  ;;  %s37_s19 = int_to_ptr.hbm [resolvable:$true] %s36_s19 }
   0x4   :  { %20 = vsyncpa [#allocation4], 0  ;;  %s2169_s20 = smov [#allocation5]   ;;  %s60_s24 = sshll.u32 %s2292_s3, 4  ;;  %s61_s24 = int_to_ptr.hbm [resolvable:$true] %s60_s24 }
   0x5   :  { %s38_s21 = sshll.u32 %s2169_s20, 4  ;;  %s2170_s25 = smov 128   ;;  %s39_s21 = int_to_ptr.vmem [resolvable:$true] %s38_s21 }
   0x6   :  { %s2171_s26 = smov 8   ;;  %s2172_s27 = smov [#allocation8]  }
   0x7   :  { %44 = dma.hbm_to_vmem [thread:$0]  %s37_s19, 2048, %s39_s21, [#allocation6], %s2170_s25, %s2170_s25, %s2171_s26  }
   0x8   :  { %s62_s28 = sshll.u32 %s2172_s27, 4  ;;  %s90_s30 = sshll.u32 %s2296_s7, 4  ;;  %s63_s28 = int_to_ptr.vmem [resolvable:$true] %s62_s28  ;;  %s91_s30 = int_to_ptr.hbm [resolvable:$true] %s90_s30 }
   0x9   :  { %68 = dma.hbm_to_vmem [thread:$0]  %s61_s24, 4096, %s63_s28, [#allocation9], %s2170_s25, %s2170_s25, %s2171_s26  }
   0xa   :  { %s26_s13 = sshll.u32 %s2289_s0, 4  ;;  %s2173_s14 = smov [#allocation11]   ;;  %s27_s13 = int_to_ptr.hbm [resolvable:$true] %s26_s13 }
   0xb   :  { %s92_s15 = sshll.u32 %s2173_s14, 4  ;;  %s2174_s16 = smov [#allocation2]   ;;  %s93_s15 = int_to_ptr.vmem [resolvable:$true] %s92_s15 }
   0xc   :  { %98 = dma.hbm_to_vmem [thread:$0]  %s91_s30, 4096, %s93_s15, [#allocation12], %s2170_s25, %s2170_s25, %s2171_s26  }
   0xd   :  { %s28_s7 = sshll.u32 %s2174_s16, 4  ;;  %s50_s19 = sshll.u32 %s2291_s2, 4  ;;  %s29_s7 = int_to_ptr.vmem [resolvable:$true] %s28_s7  ;;  %s51_s19 = int_to_ptr.hbm [resolvable:$true] %s50_s19 }
   0xe   :  { %31 = dma.hbm_to_vmem [thread:$0]  %s27_s13, 64, %s29_s7, [#allocation3]  }
   0xf   :  { %s75_s0 = sshll.u32 %s2294_s5, 4  ;;  %s2175_s22 = smov [#allocation7]   ;;  %s76_s0 = int_to_ptr.hbm [resolvable:$true] %s75_s0 }
  0x10   :  { %s52_s23 = sshll.u32 %s2175_s22, 4  ;;  %s2176_s24 = smov [#allocation10]   ;;  %s53_s23 = int_to_ptr.vmem [resolvable:$true] %s52_s23 }
  0x11   :  { %55 = dma.hbm_to_vmem [thread:$0]  %s51_s19, 32, %s53_s23, [#allocation6]  }
  0x12   :  { %s77_s27 = sshll.u32 %s2176_s24, 4  ;;  %s105_s1 = sshll.u32 %s2298_s9, 4  ;;  %s78_s27 = int_to_ptr.vmem [resolvable:$true] %s77_s27  ;;  %s106_s1 = int_to_ptr.hbm [resolvable:$true] %s105_s1 }
  0x13   :  { %83 = dma.hbm_to_vmem [thread:$0]  %s76_s0, 4096, %s78_s27, [#allocation9], %s2170_s25, %s2170_s25, %s2171_s26  }
  0x14   :  { %s2177_s2 = smov [#allocation13]   ;;  %s2178_s5 = smov 64  }
  0x15   :  { %s107_s30 = sshll.u32 %s2177_s2, 4  ;;  %s2179_s3 = smov 4   ;;  %s108_s30 = int_to_ptr.vmem [resolvable:$true] %s107_s30 }
  0x16   :  { %113 = dma.hbm_to_vmem [thread:$0]  %s106_s1, 2048, %s108_s30, [#allocation12], %s2178_s5, %s2178_s5, %s2179_s3  }
  0x17   :  { %2159 = dma.done.wait [#allocation3], 64  }
  0x18   :  { %2160 = vsyncadd [#allocation3], 4294967232 }
  0x19   :  { %2161 = dma.done.wait [#allocation6], 2080  }
  0x1a   :  { %2162 = vsyncadd [#allocation6], 4294965216 }
  0x1b   :  { %2163 = dma.done.wait [#allocation9], 8192  }
  0x1c   :  { %2164 = vsyncadd [#allocation9], 4294959104 }
  0x1d   :  { %2165 = dma.done.wait [#allocation12], 6144  }
  0x1e   :  { %2166 = vsyncadd [#allocation12], 4294961152  ;;  %v1364_v0 = vld [vmem:[#allocation5 + $0x70] sm:$0xf]  ;;  %v1833_v1 = vld [vmem:[#allocation5 + $0x74] sm:$0xf0] }
  0x1f   :  { %v1832_v2 = vld [vmem:[#allocation5 + $0x74] sm:$0xf]  ;;  %v1365_v3 = vor.u32 %v1833_v1, %v1364_v0  ;;  %v1366_v4 = vld [vmem:[#allocation5 + $0x78] sm:$0xf0]  ;;  %v1356_v5 = vld [vmem:[#allocation5 + $0x60] sm:$0xf] }
  0x20   :  { %v1831_v6 = vld [vmem:[#allocation5 + $0x64] sm:$0xf0]  ;;  %v1369_v7 = vor.u32 %v1832_v2, %v1366_v4  ;;  %v1830_v8 = vld [vmem:[#allocation5 + $0x64] sm:$0xf]  ;;  %v1358_v9 = vld [vmem:[#allocation5 + $0x68] sm:$0xf0] }
  0x21   :  { %247 = vmatpush.bf16.msra.mxu0 %v1365_v3  ;;  %v1357_v10 = vor.u32 %v1831_v6, %v1356_v5  ;;  %v1361_v11 = vor.u32 %v1830_v8, %v1358_v9  ;;  %v1348_v12 = vld [vmem:[#allocation5 + $0x50] sm:$0xf]  ;;  %v1829_v13 = vld [vmem:[#allocation5 + $0x54] sm:$0xf0]  ;;  %v1828_v14 = vld [vmem:[#allocation5 + $0x54] sm:$0xf] }
  0x22   :  { %260 = vmatpush.bf16.msra.mxu1 %v1369_v7  ;;  %v1350_v15 = vld [vmem:[#allocation5 + $0x58] sm:$0xf0]  ;;  %v1349_v16 = vor.u32 %v1829_v13, %v1348_v12  ;;  %v1340_v18 = vld [vmem:[#allocation5 + $0x40] sm:$0xf]  ;;  %v1827_v19 = vld [vmem:[#allocation5 + $0x44] sm:$0xf0] }
  0x23   :  { %v1353_v17 = vor.u32 %v1828_v14, %v1350_v15  ;;  %v1826_v20 = vld [vmem:[#allocation5 + $0x44] sm:$0xf]  ;;  %v1342_v21 = vld [vmem:[#allocation5 + $0x48] sm:$0xf0]  ;;  %v1341_v22 = vor.u32 %v1827_v19, %v1340_v18  ;;  %v1428_v23 = vld [vmem:[#allocation8 + $0x70] sm:$0xf] }
  0x24   :  { %v1849_v24 = vld [vmem:[#allocation8 + $0x74] sm:$0xf0]  ;;  %v1492_v25 = vld [vmem:[#allocation8 + $0xf0] sm:$0xf]  ;;  %v1345_v26 = vor.u32 %v1826_v20, %v1342_v21  ;;  %v1420_v34 = vld [vmem:[#allocation8 + $0x60] sm:$0xf] }
  0x25   :  { %248 = vmatpush.bf16.msra.mxu0 %v1357_v10  ;;  %v1332_v27 = vld [vmem:[#allocation5 + $0x30] sm:$0xf]  ;;  %v1825_v28 = vld [vmem:[#allocation5 + $0x34] sm:$0xf0]  ;;  %v1429_v29 = vor.u32 %v1849_v24, %v1428_v23  ;;  %v1824_v31 = vld [vmem:[#allocation5 + $0x34] sm:$0xf] }
  0x26   :  { %261 = vmatpush.bf16.msra.mxu1 %v1361_v11  ;;  %v1865_v30 = vld [vmem:[#allocation8 + $0xf4] sm:$0xf0]  ;;  %v1847_v35 = vld [vmem:[#allocation8 + $0x64] sm:$0xf0]  ;;  %v1484_v36 = vld [vmem:[#allocation8 + $0xe0] sm:$0xf]  ;;  %v1333_v38 = vor.u32 %v1825_v28, %v1332_v27 }
  0x27   :  { %v1334_v32 = vld [vmem:[#allocation5 + $0x38] sm:$0xf0]  ;;  %v1493_v33 = vor.u32 %v1865_v30, %v1492_v25  ;;  %475 = vmatpush.bf16.msra.mxu2 %v1429_v29  ;;  %v1863_v37 = vld [vmem:[#allocation8 + $0xe4] sm:$0xf0]  ;;  %v1324_v39 = vld [vmem:[#allocation5 + $0x20] sm:$0xf]  ;;  %v1421_v41 = vor.u32 %v1847_v35, %v1420_v34 }
  0x28   :  { %v1823_v40 = vld [vmem:[#allocation5 + $0x24] sm:$0xf0]  ;;  %v1485_v42 = vor.u32 %v1863_v37, %v1484_v36  ;;  %v1337_v43 = vor.u32 %v1824_v31, %v1334_v32  ;;  %v1822_v44 = vld [vmem:[#allocation5 + $0x24] sm:$0xf]  ;;  %v1412_v45 = vld [vmem:[#allocation8 + $0x50] sm:$0xf] }
  0x29   :  { %249 = vmatpush.bf16.msra.mxu0 %v1349_v16  ;;  %488 = vmatpush.bf16.msra.mxu3 %v1493_v33  ;;  %v1845_v46 = vld [vmem:[#allocation8 + $0x54] sm:$0xf0]  ;;  %v1326_v47 = vld [vmem:[#allocation5 + $0x28] sm:$0xf0]  ;;  %v1476_v48 = vld [vmem:[#allocation8 + $0xd0] sm:$0xf]  ;;  %v1325_v51 = vor.u32 %v1823_v40, %v1324_v39 }
  0x2a   :  { %262 = vmatpush.bf16.msra.mxu1 %v1353_v17  ;;  %v1861_v49 = vld [vmem:[#allocation8 + $0xd4] sm:$0xf0]  ;;  %v1413_v50 = vor.u32 %v1845_v46, %v1412_v45  ;;  %v1316_v52 = vld [vmem:[#allocation5 + $0x10] sm:$0xf]  ;;  %v1404_v54 = vld [vmem:[#allocation8 + $0x40] sm:$0xf]  ;;  %v1329_v56 = vor.u32 %v1822_v44, %v1326_v47 }
  0x2b   :  { %476 = vmatpush.bf16.msra.mxu2 %v1421_v41  ;;  %v1477_v53 = vor.u32 %v1861_v49, %v1476_v48  ;;  %v1843_v55 = vld [vmem:[#allocation8 + $0x44] sm:$0xf0]  ;;  %v1821_v57 = vld [vmem:[#allocation5 + $0x14] sm:$0xf0]  ;;  %v1468_v58 = vld [vmem:[#allocation8 + $0xc0] sm:$0xf] }
  0x2c   :  { %v1859_v59 = vld [vmem:[#allocation8 + $0xc4] sm:$0xf0]  ;;  %v1820_v60 = vld [vmem:[#allocation5 + $0x14] sm:$0xf]  ;;  %v1318_v61 = vld [vmem:[#allocation5 + $0x18] sm:$0xf0]  ;;  %v1405_v62 = vor.u32 %v1843_v55, %v1404_v54  ;;  %v1317_v63 = vor.u32 %v1821_v57, %v1316_v52 }
  0x2d   :  { %250 = vmatpush.bf16.msra.mxu0 %v1341_v22  ;;  %489 = vmatpush.bf16.msra.mxu3 %v1485_v42  ;;  %v1469_v0 = vor.u32 %v1859_v59, %v1468_v58  ;;  %v1321_v1 = vor.u32 %v1820_v60, %v1318_v61  ;;  %v1308_v2 = vld [vmem:[#allocation5] sm:$0xf]  ;;  %v1819_v3 = vld [vmem:[#allocation5 + $0x4] sm:$0xf0]  ;;  %v1818_v4 = vld [vmem:[#allocation5 + $0x4] sm:$0xf] }
  0x2e   :  { %263 = vmatpush.bf16.msra.mxu1 %v1345_v26  ;;  %v1310_v5 = vld [vmem:[#allocation5 + $0x8] sm:$0xf0]  ;;  %v1848_v6 = vld [vmem:[#allocation8 + $0x74] sm:$0xf]  ;;  %v1430_v7 = vld [vmem:[#allocation8 + $0x78] sm:$0xf0]  ;;  %v1309_v10 = vor.u32 %v1819_v3, %v1308_v2 }
  0x2f   :  { %477 = vmatpush.bf16.msra.mxu2 %v1413_v50  ;;  %v1864_v8 = vld [vmem:[#allocation8 + $0xf4] sm:$0xf]  ;;  %v1494_v9 = vld [vmem:[#allocation8 + $0xf8] sm:$0xf0]  ;;  %v1313_v11 = vor.u32 %v1818_v4, %v1310_v5  ;;  %v1433_v12 = vor.u32 %v1848_v6, %v1430_v7  ;;  %v1846_v14 = vld [vmem:[#allocation8 + $0x64] sm:$0xf] }
  0x30   :  { %v1497_v13 = vor.u32 %v1864_v8, %v1494_v9  ;;  %v1422_v15 = vld [vmem:[#allocation8 + $0x68] sm:$0xf0]  ;;  %v1862_v16 = vld [vmem:[#allocation8 + $0xe4] sm:$0xf]  ;;  %v144_v18 = vld [vmem:[#allocation2] sm:$0xf] }
  0x31   :  { %251 = vmatpush.bf16.msra.mxu0 %v1333_v38  ;;  %490 = vmatpush.bf16.msra.mxu3 %v1477_v53  ;;  %v1486_v17 = vld [vmem:[#allocation8 + $0xe8] sm:$0xf0]  ;;  %v1425_v19 = vor.u32 %v1846_v14, %v1422_v15  ;;  %v1844_v21 = vld [vmem:[#allocation8 + $0x54] sm:$0xf]  ;;  %v1414_v22 = vld [vmem:[#allocation8 + $0x58] sm:$0xf0] }
  0x32   :  { %264 = vmatpush.bf16.msra.mxu1 %v1337_v43  ;;  %v1489_v20 = vor.u32 %v1862_v16, %v1486_v17  ;;  %v1860_v23 = vld [vmem:[#allocation8 + $0xd4] sm:$0xf]  ;;  %v1478_v24 = vld [vmem:[#allocation8 + $0xd8] sm:$0xf0]  ;;  %v1417_v25 = vor.u32 %v1844_v21, %v1414_v22  ;;  %v1842_v27 = vld [vmem:[#allocation8 + $0x44] sm:$0xf] }
  0x33   :  { %478 = vmatpush.bf16.msra.mxu2 %v1405_v62  ;;  %v1481_v26 = vor.u32 %v1860_v23, %v1478_v24  ;;  %v1406_v28 = vld [vmem:[#allocation8 + $0x48] sm:$0xf0]  ;;  %v1858_v29 = vld [vmem:[#allocation8 + $0xc4] sm:$0xf]  ;;  %v1396_v33 = vld [vmem:[#allocation8 + $0x30] sm:$0xf] }
  0x34   :  { %v1470_v30 = vld [vmem:[#allocation8 + $0xc8] sm:$0xf0]  ;;  %v1409_v31 = vor.u32 %v1842_v27, %v1406_v28  ;;  %v1841_v34 = vld [vmem:[#allocation8 + $0x34] sm:$0xf0]  ;;  %v1460_v35 = vld [vmem:[#allocation8 + $0xb0] sm:$0xf] }
  0x35   :  { %252 = vmatpush.bf16.msra.mxu0 %v1325_v51  ;;  %491 = vmatpush.bf16.msra.mxu3 %v1469_v0  ;;  %v1473_v32 = vor.u32 %v1858_v29, %v1470_v30  ;;  %v1397_v36 = vor.u32 %v1841_v34, %v1396_v33  ;;  %v1857_v37 = vld [vmem:[#allocation8 + $0xb4] sm:$0xf0]  ;;  %v1840_v38 = vld [vmem:[#allocation8 + $0x34] sm:$0xf]  ;;  %v1398_v39 = vld [vmem:[#allocation8 + $0x38] sm:$0xf0] }
  0x36   :  { %265 = vmatpush.bf16.msra.mxu1 %v1329_v56  ;;  %v1461_v40 = vor.u32 %v1857_v37, %v1460_v35  ;;  %v1401_v41 = vor.u32 %v1840_v38, %v1398_v39  ;;  %v1856_v42 = vld [vmem:[#allocation8 + $0xb4] sm:$0xf]  ;;  %v1462_v43 = vld [vmem:[#allocation8 + $0xb8] sm:$0xf0]  ;;  %v1388_v45 = vld [vmem:[#allocation8 + $0x20] sm:$0xf] }
  0x37   :  { %479 = vmatpush.bf16.msra.mxu2 %v1397_v36  ;;  %v1465_v44 = vor.u32 %v1856_v42, %v1462_v43  ;;  %v1839_v46 = vld [vmem:[#allocation8 + $0x24] sm:$0xf0]  ;;  %v1452_v47 = vld [vmem:[#allocation8 + $0xa0] sm:$0xf]  ;;  %v1838_v50 = vld [vmem:[#allocation8 + $0x24] sm:$0xf] }
  0x38   :  { %v1389_v48 = vor.u32 %v1839_v46, %v1388_v45  ;;  %v1855_v49 = vld [vmem:[#allocation8 + $0xa4] sm:$0xf0]  ;;  %v1390_v51 = vld [vmem:[#allocation8 + $0x28] sm:$0xf0]  ;;  %v1854_v54 = vld [vmem:[#allocation8 + $0xa4] sm:$0xf] }
  0x39   :  { %253 = vmatpush.bf16.msra.mxu0 %v1317_v63  ;;  %492 = vmatpush.bf16.msra.mxu3 %v1461_v40  ;;  %v1453_v52 = vor.u32 %v1855_v49, %v1452_v47  ;;  %v1393_v53 = vor.u32 %v1838_v50, %v1390_v51  ;;  %v1454_v55 = vld [vmem:[#allocation8 + $0xa8] sm:$0xf0]  ;;  %v1380_v57 = vld [vmem:[#allocation8 + $0x10] sm:$0xf]  ;;  %v1837_v58 = vld [vmem:[#allocation8 + $0x14] sm:$0xf0] }
  0x3a   :  { %266 = vmatpush.bf16.msra.mxu1 %v1321_v1  ;;  %v1457_v56 = vor.u32 %v1854_v54, %v1454_v55  ;;  %v1444_v59 = vld [vmem:[#allocation8 + $0x90] sm:$0xf]  ;;  %v1381_v60 = vor.u32 %v1837_v58, %v1380_v57  ;;  %v1853_v61 = vld [vmem:[#allocation8 + $0x94] sm:$0xf0]  ;;  %v1836_v62 = vld [vmem:[#allocation8 + $0x14] sm:$0xf] }
  0x3b   :  { %480 = vmatpush.bf16.msra.mxu2 %v1389_v48  ;;  %v1382_v63 = vld [vmem:[#allocation8 + $0x18] sm:$0xf0]  ;;  %v1445_v0 = vor.u32 %v1853_v61, %v1444_v59  ;;  %v1852_v2 = vld [vmem:[#allocation8 + $0x94] sm:$0xf]  ;;  %v1372_v4 = vld [vmem:[#allocation8] sm:$0xf] }
  0x3c   :  { %v1385_v1 = vor.u32 %v1836_v62, %v1382_v63  ;;  %v1446_v3 = vld [vmem:[#allocation8 + $0x98] sm:$0xf0]  ;;  %v1835_v6 = vld [vmem:[#allocation8 + $0x4] sm:$0xf0]  ;;  %v1436_v7 = vld [vmem:[#allocation8 + $0x80] sm:$0xf] }
  0x3d   :  { %254 = vmatpush.bf16.msra.mxu0 %v1309_v10  ;;  %493 = vmatpush.bf16.msra.mxu3 %v1453_v52  ;;  %v1449_v5 = vor.u32 %v1852_v2, %v1446_v3  ;;  %v1851_v8 = vld [vmem:[#allocation8 + $0x84] sm:$0xf0]  ;;  %v1373_v9 = vor.u32 %v1835_v6, %v1372_v4  ;;  %v1438_v15 = vld [vmem:[#allocation8 + $0x88] sm:$0xf0]  ;;  %v1556_v17 = vld [vmem:[#allocation10 + $0x70] sm:$0xf] }
  0x3e   :  { %267 = vmatpush.bf16.msra.mxu1 %v1313_v11  ;;  %v1437_v10 = vor.u32 %v1851_v8, %v1436_v7  ;;  %v1834_v11 = vld [vmem:[#allocation8 + $0x4] sm:$0xf]  ;;  %v1897_v21 = vld [vmem:[#allocation10 + $0xf4] sm:$0xf0]  ;;  %v1880_v22 = vld [vmem:[#allocation10 + $0x74] sm:$0xf] }
  0x3f   :  { %481 = vmatpush.bf16.msra.mxu2 %v1381_v60  ;;  %v1558_v23 = vld [vmem:[#allocation10 + $0x78] sm:$0xf0]  ;;  %v1548_v28 = vld [vmem:[#allocation10 + $0x60] sm:$0xf]  ;;  %v1879_v30 = vld [vmem:[#allocation10 + $0x64] sm:$0xf0] }
  0x40   :  { %255 = vmatmul.bf16.vlgmr.msra.gmra.mxu0 %v144_v18  ;;  %v1622_v27 = vld [vmem:[#allocation10 + $0xf8] sm:$0xf0]  ;;  %v1549_v33 = vor.u32 %v1879_v30, %v1548_v28  ;;  %v1878_v35 = vld [vmem:[#allocation10 + $0x64] sm:$0xf]  ;;  %v1550_v36 = vld [vmem:[#allocation10 + $0x68] sm:$0xf0] }
  0x41   :  { %501 = vmatpush.bf16.msrb.mxu0 %v1433_v12  ;;  %268 = vmatmul.bf16.vlgmr.msra.gmra.mxu1 %v144_v18  ;;  %v1374_v12 = vld [vmem:[#allocation8 + $0x8] sm:$0xf0]  ;;  %v1881_v18 = vld [vmem:[#allocation10 + $0x74] sm:$0xf0]  ;;  %v1894_v37 = vld [vmem:[#allocation10 + $0xe4] sm:$0xf]  ;;  %v1553_v39 = vor.u32 %v1878_v35, %v1550_v36 }
  0x42   :  { %514 = vmatpush.bf16.msrb.mxu1 %v1497_v13  ;;  %494 = vmatpush.bf16.msra.mxu3 %v1445_v0  ;;  %v1850_v13 = vld [vmem:[#allocation8 + $0x84] sm:$0xf]  ;;  %v1377_v14 = vor.u32 %v1834_v11, %v1374_v12  ;;  %v161_v38 = vld [vmem:[#allocation7] sm:$0x3]  ;;  %v1614_v40 = vld [vmem:[#allocation10 + $0xe8] sm:$0xf0] }
  0x43   :  { %v1441_v16 = vor.u32 %v1850_v13, %v1438_v15  ;;  %482 = vmatpush.bf16.msra.mxu2 %v1373_v9  ;;  %v1877_v42 = vld [vmem:[#allocation10 + $0x54] sm:$0xf0]  ;;  %v1617_v43 = vor.u32 %v1894_v37, %v1614_v40  ;;  %v1876_v46 = vld [vmem:[#allocation10 + $0x54] sm:$0xf]  ;;  %v1542_v48 = vld [vmem:[#allocation10 + $0x58] sm:$0xf0] }
  0x44   :  { %v1893_v45 = vld [vmem:[#allocation10 + $0xd4] sm:$0xf0]  ;;  %v1892_v49 = vld [vmem:[#allocation10 + $0xd4] sm:$0xf]  ;;  %v1606_v50 = vld [vmem:[#allocation10 + $0xd8] sm:$0xf0]  ;;  %v1545_v52 = vor.u32 %v1876_v46, %v1542_v48 }
  0x45   :  { %502 = vmatpush.bf16.msrb.mxu0 %v1425_v19  ;;  %v1620_v19 = vld [vmem:[#allocation10 + $0xf0] sm:$0xf]  ;;  %v163_v54 = vperm.slane %v161_v38, 0  ;;  %v164_v55 = vperm.slane %v161_v38, 1  ;;  %v1532_v8 = vld [vmem:[#allocation10 + $0x40] sm:$0xf] }
  0x46   :  { %515 = vmatpush.bf16.msrb.mxu1 %v1489_v20  ;;  %495 = vmatpush.bf16.msra.mxu3 %v1437_v10  ;;  %v1557_v20 = vor.u32 %v1881_v18, %v1556_v17  ;;  %v1621_v24 = vor.u32 %v1897_v21, %v1620_v19  ;;  %v1875_v9 = vld [vmem:[#allocation10 + $0x44] sm:$0xf0]  ;;  %v1596_v10 = vld [vmem:[#allocation10 + $0xc0] sm:$0xf]  ;;  %v1874_v13 = vld [vmem:[#allocation10 + $0x44] sm:$0xf] }
  0x47   :  { %v1533_v11 = vor.u32 %v1875_v9, %v1532_v8  ;;  %v1891_v12 = vld [vmem:[#allocation10 + $0xc4] sm:$0xf0]  ;;  %v1890_v17 = vld [vmem:[#allocation10 + $0xc4] sm:$0xf]  ;;  %v1598_v18 = vld [vmem:[#allocation10 + $0xc8] sm:$0xf0] }
  0x48   :  { %753 = vmatpush.bf16.msrb.mxu2 %v1557_v20  ;;  %v1597_v15 = vor.u32 %v1891_v12, %v1596_v10  ;;  %v1601_v19 = vor.u32 %v1890_v17, %v1598_v18  ;;  %v1524_v20 = vld [vmem:[#allocation10 + $0x30] sm:$0xf]  ;;  %v1873_v21 = vld [vmem:[#allocation10 + $0x34] sm:$0xf0]  ;;  %v1590_v30 = vld [vmem:[#allocation10 + $0xb8] sm:$0xf0] }
  0x49   :  { %503 = vmatpush.bf16.msrb.mxu0 %v1417_v25  ;;  %v1561_v25 = vor.u32 %v1880_v22, %v1558_v23  ;;  %v1588_v22 = vld [vmem:[#allocation10 + $0xb0] sm:$0xf]  ;;  %v1525_v23 = vor.u32 %v1873_v21, %v1524_v20  ;;  %v1887_v36 = vld [vmem:[#allocation10 + $0xa4] sm:$0xf0]  ;;  %v1870_v37 = vld [vmem:[#allocation10 + $0x24] sm:$0xf] }
  0x4a   :  { %516 = vmatpush.bf16.msrb.mxu1 %v1481_v26  ;;  %v1896_v26 = vld [vmem:[#allocation10 + $0xf4] sm:$0xf]  ;;  %766 = vmatpush.bf16.msrb.mxu3 %v1621_v24  ;;  %v1889_v24 = vld [vmem:[#allocation10 + $0xb4] sm:$0xf0]  ;;  %v1518_v38 = vld [vmem:[#allocation10 + $0x28] sm:$0xf0] }
  0x4b   :  { %v1625_v29 = vor.u32 %v1896_v26, %v1622_v27  ;;  %v1526_v26 = vld [vmem:[#allocation10 + $0x38] sm:$0xf0]  ;;  %v1589_v27 = vor.u32 %v1889_v24, %v1588_v22  ;;  %v1521_v40 = vor.u32 %v1870_v37, %v1518_v38  ;;  %v1572_v46 = vld [vmem:[#allocation10 + $0x90] sm:$0xf]  ;;  %v1885_v48 = vld [vmem:[#allocation10 + $0x94] sm:$0xf0] }
  0x4c   :  { %754 = vmatpush.bf16.msrb.mxu2 %v1549_v33  ;;  %v1871_v33 = vld [vmem:[#allocation10 + $0x24] sm:$0xf0]  ;;  %v1913_v8 = vld [vmem:[#allocation11 + $0x74] sm:$0xf0]  ;;  %v1748_v9 = vld [vmem:[#allocation11 + $0xf0] sm:$0xf] }
  0x4d   :  { %504 = vmatpush.bf16.msrb.mxu0 %v1409_v31  ;;  %v1612_v31 = vld [vmem:[#allocation10 + $0xe0] sm:$0xf]  ;;  %v1929_v12 = vld [vmem:[#allocation11 + $0xf4] sm:$0xf0]  ;;  %v1928_v17 = vld [vmem:[#allocation11 + $0xf4] sm:$0xf] }
  0x4e   :  { %517 = vmatpush.bf16.msrb.mxu1 %v1473_v32  ;;  %v1895_v32 = vld [vmem:[#allocation10 + $0xe4] sm:$0xf0]  ;;  %v1750_v18 = vld [vmem:[#allocation11 + $0xf8] sm:$0xf0]  ;;  %v1740_v22 = vld [vmem:[#allocation11 + $0xe0] sm:$0xf] }
  0x4f   :  { %v1613_v34 = vor.u32 %v1895_v32, %v1612_v31  ;;  %v1516_v32 = vld [vmem:[#allocation10 + $0x20] sm:$0xf]  ;;  %v1753_v20 = vor.u32 %v1928_v17, %v1750_v18  ;;  %v1911_v21 = vld [vmem:[#allocation11 + $0x64] sm:$0xf0]  ;;  %v1925_v37 = vld [vmem:[#allocation11 + $0xd4] sm:$0xf0] }
  0x50   :  { %v1517_v35 = vor.u32 %v1871_v33, %v1516_v32  ;;  %v1742_v32 = vld [vmem:[#allocation11 + $0xe8] sm:$0xf0]  ;;  %v1668_v33 = vld [vmem:[#allocation11 + $0x50] sm:$0xf]  ;;  %v1908_v38 = vld [vmem:[#allocation11 + $0x54] sm:$0xf] }
  0x51   :  { %505 = vmatpush.bf16.msrb.mxu0 %v1401_v41  ;;  %v1540_v41 = vld [vmem:[#allocation10 + $0x50] sm:$0xf]  ;;  %767 = vmatpush.bf16.msrb.mxu3 %v1613_v34  ;;  %v1580_v34 = vld [vmem:[#allocation10 + $0xa0] sm:$0xf]  ;;  %v1922_v18 = vld [vmem:[#allocation11 + $0xc4] sm:$0xf] }
  0x52   :  { %518 = vmatpush.bf16.msrb.mxu1 %v1465_v44  ;;  %v1604_v44 = vld [vmem:[#allocation10 + $0xd0] sm:$0xf]  ;;  %v1541_v47 = vor.u32 %v1877_v42, %v1540_v41  ;;  %v1886_v41 = vld [vmem:[#allocation10 + $0xa4] sm:$0xf]  ;;  %v1582_v42 = vld [vmem:[#allocation10 + $0xa8] sm:$0xf0] }
  0x53   :  { %v1605_v51 = vor.u32 %v1893_v45, %v1604_v44  ;;  %v1508_v44 = vld [vmem:[#allocation10 + $0x10] sm:$0xf]  ;;  %v1869_v45 = vld [vmem:[#allocation10 + $0x14] sm:$0xf0]  ;;  %s2180_s14 = smov [#allocation14]   ;;  %s1293_s7 = sshll.u32 %s2300_s11, 4  ;;  %s1294_s7 = int_to_ptr.hbm [resolvable:$true] %s1293_s7 }
  0x54   :  { %755 = vmatpush.bf16.msrb.mxu2 %v1541_v47  ;;  %v1509_v47 = vor.u32 %v1869_v45, %v1508_v44  ;;  %s1291_s15 = sshll.u32 %s2180_s14, 4  ;;  %s1292_s15 = int_to_ptr.vmem [resolvable:$true] %s1291_s15 }
  0x55   :  { %506 = vmatpush.bf16.msrb.mxu0 %v1393_v53  ;;  %v1609_v53 = vor.u32 %v1892_v49, %v1606_v50  ;;  %768 = vmatpush.bf16.msrb.mxu3 %v1605_v51  ;;  %v1868_v49 = vld [vmem:[#allocation10 + $0x14] sm:$0xf]  ;;  %v1510_v50 = vld [vmem:[#allocation10 + $0x18] sm:$0xf0]  ;;  %v1573_v51 = vor.u32 %v1885_v48, %v1572_v46 }
  0x56   :  { %519 = vmatpush.bf16.msrb.mxu1 %v1457_v56 }
  0x58   :  { %756 = vmatpush.bf16.msrb.mxu2 %v1533_v11 }
  0x59   :  { %507 = vmatpush.bf16.msrb.mxu0 %v1385_v1  ;;  %769 = vmatpush.bf16.msrb.mxu3 %v1597_v15  ;;  %v1749_v15 = vor.u32 %v1929_v12, %v1748_v9  ;;  %v1660_v9 = vld [vmem:[#allocation11 + $0x40] sm:$0xf] }
  0x5a   :  { %520 = vmatpush.bf16.msrb.mxu1 %v1449_v5 }
  0x5c   :  { %757 = vmatpush.bf16.msrb.mxu2 %v1525_v23  ;;  %v1927_v23 = vld [vmem:[#allocation11 + $0xe4] sm:$0xf0] }
  0x5d   :  { %508 = vmatpush.bf16.msrb.mxu0 %v1377_v14  ;;  %v1534_v14 = vld [vmem:[#allocation10 + $0x48] sm:$0xf0]  ;;  %770 = vmatpush.bf16.msrb.mxu3 %v1589_v27 }
  0x5e   :  { %521 = vmatpush.bf16.msrb.mxu1 %v1441_v16  ;;  %v1537_v16 = vor.u32 %v1874_v13, %v1534_v14  ;;  %v1912_v13 = vld [vmem:[#allocation11 + $0x74] sm:$0xf]  ;;  %v1686_v14 = vld [vmem:[#allocation11 + $0x78] sm:$0xf0]  ;;  %v1678_v27 = vld [vmem:[#allocation11 + $0x68] sm:$0xf0] }
  0x60   :  { %758 = vmatpush.bf16.msrb.mxu2 %v1517_v35 }
  0x61   :  { %779 = vmatpush.bf16.msra.mxu0 %v1561_v25  ;;  %v1872_v25 = vld [vmem:[#allocation10 + $0x34] sm:$0xf] }
  0x62   :  { %792 = vmatpush.bf16.msra.mxu1 %v1625_v29  ;;  %v1529_v28 = vor.u32 %v1872_v25, %v1526_v26  ;;  %v1888_v29 = vld [vmem:[#allocation10 + $0xb4] sm:$0xf]  ;;  %v1741_v25 = vor.u32 %v1927_v23, %v1740_v22  ;;  %v1910_v26 = vld [vmem:[#allocation11 + $0x64] sm:$0xf]  ;;  %v1905_v22 = vld [vmem:[#allocation11 + $0x34] sm:$0xf0] }
  0x63   :  { %v1593_v31 = vor.u32 %v1888_v29, %v1590_v30  ;;  %v1716_v23 = vld [vmem:[#allocation11 + $0xb0] sm:$0xf] }
  0x64   :  { %759 = vmatpush.bf16.msrb.mxu2 %v1509_v47 }
  0x65   :  { %780 = vmatpush.bf16.msra.mxu0 %v1553_v39  ;;  %v1581_v39 = vor.u32 %v1887_v36, %v1580_v34  ;;  %v1909_v34 = vld [vmem:[#allocation11 + $0x54] sm:$0xf0]  ;;  %v1732_v36 = vld [vmem:[#allocation11 + $0xd0] sm:$0xf] }
  0x66   :  { %793 = vmatpush.bf16.msra.mxu1 %v1617_v43  ;;  %v1585_v43 = vor.u32 %v1886_v41, %v1582_v42  ;;  %v1924_v41 = vld [vmem:[#allocation11 + $0xd4] sm:$0xf]  ;;  %v1734_v42 = vld [vmem:[#allocation11 + $0xd8] sm:$0xf0] }
  0x67   :  { %771 = vmatpush.bf16.msrb.mxu3 %v1581_v39  ;;  %v1669_v39 = vor.u32 %v1909_v34, %v1668_v33  ;;  %v1737_v47 = vor.u32 %v1924_v41, %v1734_v42  ;;  %v1644_v33 = vld [vmem:[#allocation11 + $0x20] sm:$0xf]  ;;  %v1903_v34 = vld [vmem:[#allocation11 + $0x24] sm:$0xf0]  ;;  %v1918_v42 = vld [vmem:[#allocation11 + $0xa4] sm:$0xf] }
  0x69   :  { %781 = vmatpush.bf16.msra.mxu0 %v1545_v52  ;;  %v1513_v52 = vor.u32 %v1868_v49, %v1510_v50 }
  0x6a   :  { %794 = vmatpush.bf16.msra.mxu1 %v1609_v53  ;;  %v1884_v53 = vld [vmem:[#allocation10 + $0x94] sm:$0xf] }
  0x6b   :  { %772 = vmatpush.bf16.msrb.mxu3 %v1573_v51 }
  0x6d   :  { %782 = vmatpush.bf16.msra.mxu0 %v1537_v16  ;;  %v1689_v16 = vor.u32 %v1912_v13, %v1686_v14  ;;  %v1923_v13 = vld [vmem:[#allocation11 + $0xc4] sm:$0xf0]  ;;  %v1906_v14 = vld [vmem:[#allocation11 + $0x44] sm:$0xf] }
  0x6e   :  { %795 = vmatpush.bf16.msra.mxu1 %v1601_v19  ;;  %v1676_v19 = vld [vmem:[#allocation11 + $0x60] sm:$0xf] }
  0x6f   :  { %v1677_v24 = vor.u32 %v1911_v21, %v1676_v19  ;;  %v1726_v19 = vld [vmem:[#allocation11 + $0xc8] sm:$0xf0]  ;;  %v1652_v21 = vld [vmem:[#allocation11 + $0x30] sm:$0xf] }
  0x71   :  { %783 = vmatpush.bf16.msra.mxu0 %v1529_v28  ;;  %v1926_v28 = vld [vmem:[#allocation11 + $0xe4] sm:$0xf] }
  0x72   :  { %796 = vmatpush.bf16.msra.mxu1 %v1593_v31  ;;  %v1681_v31 = vor.u32 %v1910_v26, %v1678_v27  ;;  %v1745_v35 = vor.u32 %v1926_v28, %v1742_v32  ;;  %v1904_v26 = vld [vmem:[#allocation11 + $0x34] sm:$0xf]  ;;  %v1654_v27 = vld [vmem:[#allocation11 + $0x38] sm:$0xf0] }
  0x75   :  { %784 = vmatpush.bf16.msra.mxu0 %v1521_v40  ;;  %v1670_v40 = vld [vmem:[#allocation11 + $0x58] sm:$0xf0] }
  0x76   :  { %797 = vmatpush.bf16.msra.mxu1 %v1585_v43  ;;  %v1733_v43 = vor.u32 %v1925_v37, %v1732_v36  ;;  %v1673_v44 = vor.u32 %v1908_v38, %v1670_v40  ;;  %v1645_v36 = vor.u32 %v1903_v34, %v1644_v33  ;;  %v1919_v37 = vld [vmem:[#allocation11 + $0xa4] sm:$0xf0]  ;;  %v1902_v38 = vld [vmem:[#allocation11 + $0x24] sm:$0xf] }
  0x79   :  { %785 = vmatpush.bf16.msra.mxu0 %v1513_v52 }
  0xbd   :  { %v256_v56 = vpop.f32.mrf.mxu0 }
  0xbe   :  { %v257_v57 = vadd.f32 %v256_v56, %v163_v54  ;;  %v269_v58 = vpop.f32.mrf.mxu1  ;;  %v1574_v54 = vld [vmem:[#allocation10 + $0x98] sm:$0xf0]  ;;  %v528_v56 = vld [vmem:[%s2293_s4] sm:$0x3] }
  0xbf   :  { %v270_v59 = vadd.f32 %v269_v58, %v164_v55  ;;  %v1577_v55 = vor.u32 %v1884_v53, %v1574_v54  ;;  %v1867_v58 = vld [vmem:[#allocation10 + $0x4] sm:$0xf0] }
  0xc0   :  { %v273_v60 = vmul.f32 0.5, %v257_v57  ;;  %v1500_v57 = vld [vmem:[#allocation10] sm:$0xf] }
  0xc1   :  { %v274_v61 = vmul.f32 0.5, %v270_v59  ;;  %v1564_v59 = vld [vmem:[#allocation10 + $0x80] sm:$0xf]  ;;  %798 = vmatpush.bf16.msra.mxu1 %v1577_v55 }
  0xc2   :  { %1959 = vtanh.f32 %v273_v60  ;;  %v1501_v60 = vor.u32 %v1867_v58, %v1500_v57 }
  0xc3   :  { %1961 = vtanh.f32 %v274_v61  ;;  %v1883_v61 = vld [vmem:[#allocation10 + $0x84] sm:$0xf0] }
  0xc4   :  { %760 = vmatpush.bf16.msrb.mxu2 %v1501_v60 }
  0xc5   :  { %v258_v62 = vpop.f32.mrf.mxu0 }
  0xc6   :  { %v271_v63 = vpop.f32.mrf.mxu1  ;;  %v1866_v62 = vld [vmem:[#allocation10 + $0x4] sm:$0xf] }
  0xc7   :  { %v1502_v63 = vld [vmem:[#allocation10 + $0x8] sm:$0xf0] }
  0xc8   :  { %v1960_v0 = vpop.eup %1959 }
  0xc9   :  { %v1962_v1 = vpop.eup %1961  ;;  %v277_v2 = vmul.f32 0.5, %v1960_v0  ;;  %v1565_v0 = vor.u32 %v1883_v61, %v1564_v59 }
  0xca   :  { %v278_v3 = vmul.f32 0.5, %v1962_v1  ;;  %v1505_v1 = vor.u32 %v1866_v62, %v1502_v63 }
  0xcb   :  { %v279_v4 = vadd.f32 0.5, %v277_v2  ;;  %v1882_v2 = vld [vmem:[#allocation10 + $0x84] sm:$0xf]  ;;  %773 = vmatpush.bf16.msrb.mxu3 %v1565_v0 }
  0xcc   :  { %v280_v5 = vadd.f32 0.5, %v278_v3  ;;  %v1566_v3 = vld [vmem:[#allocation10 + $0x88] sm:$0xf0]  ;;  %786 = vmatpush.bf16.msra.mxu0 %v1505_v1 }
  0xcd   :  { %v281_v6 = vpack.c.bf16 %v279_v4, %v279_v4  ;;  %v1569_v4 = vor.u32 %v1882_v2, %v1566_v3 }
  0xce   :  { %v282_v7 = vpack.c.bf16 %v280_v5, %v280_v5  ;;  %v530_v5 = vperm.slane %v528_v56, 0 }
  0xcf   :  { %483 = vmatmul.bf16.vlgmr.msra.gmra.mxu2 %v281_v6  ;;  %509 = vmatmul.bf16.vlgmr.msrb.gmra.mxu0 %v281_v6  ;;  %v531_v6 = vperm.slane %v528_v56, 1 }
  0xd0   :  { %496 = vmatmul.bf16.vlgmr.msra.gmra.mxu3 %v282_v7  ;;  %522 = vmatmul.bf16.vlgmr.msrb.gmra.mxu1 %v282_v7  ;;  %v1684_v7 = vld [vmem:[#allocation11 + $0x70] sm:$0xf] }
  0xd1   :  { %799 = vmatpush.bf16.msra.mxu1 %v1569_v4  ;;  %v534_v10 = vpack.c.bf16 %v531_v6, %v530_v5  ;;  %v1685_v11 = vor.u32 %v1913_v8, %v1684_v7  ;;  %1044 = vmatpush.bf16.msra.mxu3 %v1749_v15  ;;  %v1662_v15 = vld [vmem:[#allocation11 + $0x48] sm:$0xf0] }
  0xd2   :  { %1057 = vmatpush.bf16.msrb.mxu0 %v1689_v16  ;;  %v1665_v17 = vor.u32 %v1906_v14, %v1662_v15  ;;  %v1935_v15 = vld [vmem:[#allocation13 + $0x28] sm:$0xff] }
  0xd3   :  { %1031 = vmatpush.bf16.msra.mxu2 %v1685_v11  ;;  %v536_v29 = vunpack.c.l.b16 %v534_v10  ;;  %v537_v30 = vunpack.c.h.b16 %v534_v10  ;;  %v1907_v10 = vld [vmem:[#allocation11 + $0x44] sm:$0xf0]  ;;  %v1724_v11 = vld [vmem:[#allocation11 + $0xc0] sm:$0xf] }
  0xd4   :  { %v1661_v12 = vor.u32 %v1907_v10, %v1660_v9  ;;  %v1725_v16 = vor.u32 %v1923_v13, %v1724_v11  ;;  %v1945_v9 = vld [vmem:[#allocation13 + $0x78] sm:$0xff]  ;;  %v1936_v11 = vld [vmem:[#allocation13 + $0x30] sm:$0xff] }
  0xd5   :  { %1070 = vmatpush.bf16.msrb.mxu1 %v1753_v20  ;;  %1045 = vmatpush.bf16.msra.mxu3 %v1741_v25  ;;  %v538_v45 = vpack.c.b16 %v536_v29, %v536_v29  ;;  %v539_v46 = vpack.c.b16 %v537_v30, %v537_v30  ;;  %v1729_v20 = vor.u32 %v1922_v18, %v1726_v19  ;;  %v1921_v25 = vld [vmem:[#allocation11 + $0xb4] sm:$0xf0]  ;;  %v1920_v30 = vld [vmem:[#allocation11 + $0xb4] sm:$0xf] }
  0xd6   :  { %1058 = vmatpush.bf16.msrb.mxu0 %v1681_v31  ;;  %v1717_v28 = vor.u32 %v1921_v25, %v1716_v23  ;;  %v1657_v29 = vor.u32 %v1904_v26, %v1654_v27  ;;  %v1718_v31 = vld [vmem:[#allocation11 + $0xb8] sm:$0xf0] }
  0xd7   :  { %1032 = vmatpush.bf16.msra.mxu2 %v1677_v24  ;;  %v541_v50 = vpack.i.b16 %v538_v45, %v538_v45  ;;  %v545_v51 = vpack.i.b16 %v539_v46, %v539_v46  ;;  %v1653_v24 = vor.u32 %v1905_v22, %v1652_v21  ;;  %v1721_v32 = vor.u32 %v1920_v30, %v1718_v31  ;;  %v1636_v45 = vld [vmem:[#allocation11 + $0x10] sm:$0xf]  ;;  %v1901_v46 = vld [vmem:[#allocation11 + $0x14] sm:$0xf0] }
  0xd9   :  { %1071 = vmatpush.bf16.msrb.mxu1 %v1745_v35  ;;  %1046 = vmatpush.bf16.msra.mxu3 %v1733_v43  ;;  %v543_v53 = vperm.slane %v541_v50, 0  ;;  %v547_v54 = vperm.slane %v545_v51, 0  ;;  %v1708_v35 = vld [vmem:[#allocation11 + $0xa0] sm:$0xf]  ;;  %v1710_v43 = vld [vmem:[#allocation11 + $0xa8] sm:$0xf0] }
  0xda   :  { %1059 = vmatpush.bf16.msrb.mxu0 %v1673_v44  ;;  %v1709_v40 = vor.u32 %v1919_v37, %v1708_v35  ;;  %v1713_v44 = vor.u32 %v1918_v42, %v1710_v43  ;;  %v1900_v50 = vld [vmem:[#allocation11 + $0x14] sm:$0xf] }
  0xdb   :  { %1033 = vmatpush.bf16.msra.mxu2 %v1669_v39  ;;  %v550_v61 = vunpack.c.l.bf16 %v543_v53  ;;  %v551_v62 = vunpack.c.l.bf16 %v547_v54  ;;  %v1646_v39 = vld [vmem:[#allocation11 + $0x28] sm:$0xf0]  ;;  %v1916_v53 = vld [vmem:[#allocation11 + $0x94] sm:$0xf]  ;;  %v1702_v54 = vld [vmem:[#allocation11 + $0x98] sm:$0xf0] }
  0xdc   :  { %v1649_v41 = vor.u32 %v1902_v38, %v1646_v39 }
  0xdd   :  { %1072 = vmatpush.bf16.msrb.mxu1 %v1737_v47  ;;  %1047 = vmatpush.bf16.msra.mxu3 %v1725_v16  ;;  %v1700_v47 = vld [vmem:[#allocation11 + $0x90] sm:$0xf]  ;;  %v1943_v16 = vld [vmem:[#allocation13 + $0x68] sm:$0xff] }
  0xde   :  { %1060 = vmatpush.bf16.msrb.mxu0 %v1665_v17 }
  0xdf   :  { %1034 = vmatpush.bf16.msra.mxu2 %v1661_v12  ;;  %v1944_v12 = vld [vmem:[#allocation13 + $0x70] sm:$0xff] }
  0xe1   :  { %1073 = vmatpush.bf16.msrb.mxu1 %v1729_v20  ;;  %1048 = vmatpush.bf16.msra.mxu3 %v1717_v28 }
  0xe2   :  { %1061 = vmatpush.bf16.msrb.mxu0 %v1657_v29 }
  0xe3   :  { %1035 = vmatpush.bf16.msra.mxu2 %v1653_v24 }
  0xe5   :  { %1074 = vmatpush.bf16.msrb.mxu1 %v1721_v32  ;;  %1049 = vmatpush.bf16.msra.mxu3 %v1709_v40 }
  0xe6   :  { %1062 = vmatpush.bf16.msrb.mxu0 %v1649_v41 }
  0xe7   :  { %1036 = vmatpush.bf16.msra.mxu2 %v1645_v36 }
  0xe9   :  { %1075 = vmatpush.bf16.msrb.mxu1 %v1713_v44  ;;  %v1934_v44 = vld [vmem:[#allocation13 + $0x20] sm:$0xff] }
 0x14c   :  { %v510_v48 = vpop.f32.mrf.mxu0 }
 0x14d   :  { %v523_v49 = vpop.f32.mrf.mxu1 }
 0x14e   :  { %v524_v56 = vadd.f32 %v523_v49, %v510_v48  ;;  %v1637_v48 = vor.u32 %v1901_v46, %v1636_v45  ;;  %v1917_v49 = vld [vmem:[#allocation11 + $0x94] sm:$0xf0]  ;;  %v1942_v45 = vld [vmem:[#allocation13 + $0x60] sm:$0xff] }
 0x14f   :  { %v1701_v51 = vor.u32 %v1917_v49, %v1700_v47  ;;  %v1933_v46 = vld [vmem:[#allocation13 + $0x18] sm:$0xff]  ;;  %v1940_v49 = vld [vmem:[#allocation13 + $0x50] sm:$0xff] }
 0x150   :  { %1037 = vmatpush.bf16.msra.mxu2 %v1637_v48  ;;  %v1941_v47 = vld [vmem:[#allocation13 + $0x58] sm:$0xff]  ;;  %v1932_v48 = vld [vmem:[#allocation13 + $0x10] sm:$0xff] }
 0x151   :  { %1050 = vmatpush.bf16.msra.mxu3 %v1701_v51  ;;  %v1939_v51 = vld [vmem:[#allocation13 + $0x48] sm:$0xff] }
 0x152   :  { %v484_v52 = vpop.f32.mrf.mxu2 }
 0x153   :  { %v497_v55 = vpop.f32.mrf.mxu3 }
 0x154   :  { %v498_v57 = vadd.f32 %v497_v55, %v484_v52  ;;  %v512_v58 = vpop.f32.mrf.mxu0  ;;  %v1638_v52 = vld [vmem:[#allocation11 + $0x18] sm:$0xf0]  ;;  %v806_v55 = vld [vmem:[%s2295_s6] sm:$0x3] }
 0x155   :  { %v525_v59 = vpop.f32.mrf.mxu1  ;;  %v1628_v58 = vld [vmem:[#allocation11] sm:$0xf] }
 0x156   :  { %v527_v60 = vpack.c.bf16 %v524_v56, %v498_v57  ;;  %v1641_v56 = vor.u32 %v1900_v50, %v1638_v52  ;;  %v1705_v57 = vor.u32 %v1916_v53, %v1702_v54  ;;  %v1899_v59 = vld [vmem:[#allocation11 + $0x4] sm:$0xf0]  ;;  %v1084_v52 = vld [vmem:[%s2297_s8] sm:$0x3]  ;;  %v1930_v53 = vld [vmem:[#allocation13] sm:$0xff] }
 0x157   :  { %v1931_v50 = vld [vmem:[#allocation13 + $0x8] sm:$0xff]  ;;  %v1938_v54 = vld [vmem:[#allocation13 + $0x40] sm:$0xff] }
 0x158   :  { %v548_v63 = vunpack.c.l.bf16 %v527_v60  ;;  %v549_v0 = vunpack.c.h.bf16 %v527_v60  ;;  %v1692_v60 = vld [vmem:[#allocation11 + $0x80] sm:$0xf]  ;;  %1063 = vmatpush.bf16.msrb.mxu0 %v1641_v56  ;;  %1076 = vmatpush.bf16.msrb.mxu1 %v1705_v57  ;;  %v1087_v56 = vperm.slane %v1084_v52, 1 }
 0x15a   :  { %v486_v1 = vpop.f32.mrf.mxu2  ;;  %v552_v2 = vadd.f32 %v550_v61, %v548_v63  ;;  %v553_v3 = vadd.f32 %v551_v62, %v549_v0  ;;  %v1629_v61 = vor.u32 %v1899_v59, %v1628_v58  ;;  %v1915_v62 = vld [vmem:[#allocation11 + $0x84] sm:$0xf0]  ;;  %v1898_v63 = vld [vmem:[#allocation11 + $0x4] sm:$0xf]  ;;  %v1630_v0 = vld [vmem:[#allocation11 + $0x8] sm:$0xf0] }
 0x15b   :  { %v499_v4 = vpop.f32.mrf.mxu3  ;;  %v1693_v1 = vor.u32 %v1915_v62, %v1692_v60 }
 0x15c   :  { %v557_v5 = vmax.f32 %v552_v2, 0.0  ;;  %v558_v6 = vmax.f32 %v553_v3, 0.0  ;;  %v1633_v2 = vor.u32 %v1898_v63, %v1630_v0  ;;  %v1914_v3 = vld [vmem:[#allocation11 + $0x84] sm:$0xf]  ;;  %v1694_v4 = vld [vmem:[#allocation11 + $0x88] sm:$0xf0]  ;;  %1038 = vmatpush.bf16.msra.mxu2 %v1629_v61 }
 0x15d   :  { %1051 = vmatpush.bf16.msra.mxu3 %v1693_v1 }
 0x15e   :  { %v559_v7 = vpack.c.bf16 %v557_v5, %v557_v5  ;;  %v560_v8 = vpack.c.bf16 %v558_v6, %v558_v6  ;;  %v808_v5 = vperm.slane %v806_v55, 0  ;;  %v809_v6 = vperm.slane %v806_v55, 1  ;;  %1064 = vmatpush.bf16.msrb.mxu0 %v1633_v2 }
 0x15f   :  { %v1086_v55 = vperm.slane %v1084_v52, 0 }
 0x160   :  { %761 = vmatmul.bf16.vlgmr.msrb.gmra.mxu2 %v559_v7  ;;  %774 = vmatmul.bf16.vlgmr.msrb.gmra.mxu3 %v560_v8  ;;  %v812_v10 = vpack.c.bf16 %v809_v6, %v808_v5 }
 0x161   :  { %787 = vmatmul.bf16.vlgmr.msra.gmra.mxu0 %v559_v7  ;;  %800 = vmatmul.bf16.vlgmr.msra.gmra.mxu1 %v560_v8  ;;  %v1697_v7 = vor.u32 %v1914_v3, %v1694_v4  ;;  %v1937_v8 = vld [vmem:[#allocation13 + $0x38] sm:$0xff]  ;;  %v1090_v57 = vpack.c.bf16 %v1087_v56, %v1086_v55 }
 0x162   :  { %1249 = vmatpush.bf16.msrb.mxu2 %v1937_v8  ;;  %1262 = vmatpush.bf16.msrb.mxu3 %v1945_v9  ;;  %v814_v13 = vunpack.c.l.b16 %v812_v10  ;;  %v815_v14 = vunpack.c.h.b16 %v812_v10 }
 0x163   :  { %1077 = vmatpush.bf16.msrb.mxu1 %v1697_v7  ;;  %v1092_v58 = vunpack.c.l.b16 %v1090_v57  ;;  %v1093_v59 = vunpack.c.h.b16 %v1090_v57 }
 0x164   :  { %v816_v17 = vpack.c.b16 %v814_v13, %v814_v13  ;;  %v817_v18 = vpack.c.b16 %v815_v14, %v815_v14 }
 0x165   :  { %v1094_v60 = vpack.c.b16 %v1092_v58, %v1092_v58  ;;  %v1095_v61 = vpack.c.b16 %v1093_v59, %v1093_v59 }
 0x166   :  { %1250 = vmatpush.bf16.msrb.mxu2 %v1936_v11  ;;  %1263 = vmatpush.bf16.msrb.mxu3 %v1944_v12  ;;  %v819_v21 = vpack.i.b16 %v816_v17, %v816_v17  ;;  %v823_v22 = vpack.i.b16 %v817_v18, %v817_v18 }
 0x167   :  { %v1097_v0 = vpack.i.b16 %v1094_v60, %v1094_v60  ;;  %v1101_v1 = vpack.i.b16 %v1095_v61, %v1095_v61 }
 0x168   :  { %v821_v23 = vperm.slane %v819_v21, 0  ;;  %v825_v24 = vperm.slane %v823_v22, 0 }
 0x169   :  { %v1099_v2 = vperm.slane %v1097_v0, 0  ;;  %v1103_v3 = vperm.slane %v1101_v1, 0 }
 0x16a   :  { %1251 = vmatpush.bf16.msrb.mxu2 %v1935_v15  ;;  %1264 = vmatpush.bf16.msrb.mxu3 %v1943_v16  ;;  %v828_v30 = vunpack.c.l.bf16 %v821_v23  ;;  %v829_v31 = vunpack.c.l.bf16 %v825_v24  ;;  %v1958_v23 = vld [vmem:[%s2299_s10] ss:$0 sm:$0xff] }
 0x16b   :  { %v1106_v9 = vunpack.c.l.bf16 %v1099_v2  ;;  %v1107_v10 = vunpack.c.l.bf16 %v1103_v3 }
 0x16e   :  { %1252 = vmatpush.bf16.msrb.mxu2 %v1934_v44  ;;  %1265 = vmatpush.bf16.msrb.mxu3 %v1942_v45 }
 0x172   :  { %1253 = vmatpush.bf16.msrb.mxu2 %v1933_v46  ;;  %1266 = vmatpush.bf16.msrb.mxu3 %v1941_v47 }
 0x176   :  { %1254 = vmatpush.bf16.msrb.mxu2 %v1932_v48  ;;  %1267 = vmatpush.bf16.msrb.mxu3 %v1940_v49 }
 0x17a   :  { %1255 = vmatpush.bf16.msrb.mxu2 %v1931_v50  ;;  %1268 = vmatpush.bf16.msrb.mxu3 %v1939_v51 }
 0x17e   :  { %1256 = vmatpush.bf16.msrb.mxu2 %v1930_v53  ;;  %1269 = vmatpush.bf16.msrb.mxu3 %v1938_v54 }
 0x1de   :  { %v788_v19 = vpop.f32.mrf.mxu0  ;;  %v801_v20 = vpop.f32.mrf.mxu1 }
 0x1df   :  { %v802_v27 = vadd.f32 %v801_v20, %v788_v19 }
 0x1e3   :  { %v762_v25 = vpop.f32.mrf.mxu2  ;;  %v775_v26 = vpop.f32.mrf.mxu3 }
 0x1e4   :  { %v776_v28 = vadd.f32 %v775_v26, %v762_v25 }
 0x1e6   :  { %v805_v29 = vpack.c.bf16 %v802_v27, %v776_v28  ;;  %v790_v32 = vpop.f32.mrf.mxu0  ;;  %v803_v33 = vpop.f32.mrf.mxu1 }
 0x1e8   :  { %v826_v34 = vunpack.c.l.bf16 %v805_v29  ;;  %v827_v35 = vunpack.c.h.bf16 %v805_v29 }
 0x1ea   :  { %v830_v36 = vadd.f32 %v828_v30, %v826_v34  ;;  %v831_v37 = vadd.f32 %v829_v31, %v827_v35 }
 0x1eb   :  { %v764_v38 = vpop.f32.mrf.mxu2  ;;  %v777_v39 = vpop.f32.mrf.mxu3 }
 0x1ec   :  { %v835_v40 = vmax.f32 %v830_v36, 0.0  ;;  %v836_v41 = vmax.f32 %v831_v37, 0.0 }
 0x1ee   :  { %v837_v42 = vpack.c.bf16 %v835_v40, %v835_v40  ;;  %v838_v43 = vpack.c.bf16 %v836_v41, %v836_v41 }
 0x1f0   :  { %1039 = vmatmul.bf16.vlgmr.msra.gmra.mxu2 %v837_v42  ;;  %1052 = vmatmul.bf16.vlgmr.msra.gmra.mxu3 %v838_v43 }
 0x1f1   :  { %1065 = vmatmul.bf16.vlgmr.msrb.gmra.mxu0 %v837_v42  ;;  %1078 = vmatmul.bf16.vlgmr.msrb.gmra.mxu1 %v838_v43 }
 0x26e   :  { %v1066_v62 = vpop.f32.mrf.mxu0  ;;  %v1079_v63 = vpop.f32.mrf.mxu1 }
 0x26f   :  { %v1080_v6 = vadd.f32 %v1079_v63, %v1066_v62 }
 0x273   :  { %v1040_v4 = vpop.f32.mrf.mxu2  ;;  %v1053_v5 = vpop.f32.mrf.mxu3 }
 0x274   :  { %v1054_v7 = vadd.f32 %v1053_v5, %v1040_v4 }
 0x276   :  { %v1083_v8 = vpack.c.bf16 %v1080_v6, %v1054_v7  ;;  %v1068_v11 = vpop.f32.mrf.mxu0  ;;  %v1081_v12 = vpop.f32.mrf.mxu1 }
 0x278   :  { %v1104_v13 = vunpack.c.l.bf16 %v1083_v8  ;;  %v1105_v14 = vunpack.c.h.bf16 %v1083_v8 }
 0x27a   :  { %v1108_v15 = vadd.f32 %v1106_v9, %v1104_v13  ;;  %v1109_v16 = vadd.f32 %v1107_v10, %v1105_v14 }
 0x27b   :  { %v1042_v17 = vpop.f32.mrf.mxu2  ;;  %v1055_v18 = vpop.f32.mrf.mxu3 }
 0x27c   :  { %v1113_v19 = vmax.f32 %v1108_v15, 0.0  ;;  %v1114_v20 = vmax.f32 %v1109_v16, 0.0 }
 0x27e   :  { %v1115_v21 = vpack.c.bf16 %v1113_v19, %v1113_v19  ;;  %v1116_v22 = vpack.c.bf16 %v1114_v20, %v1114_v20 }
 0x280   :  { %1257 = vmatmul.bf16.vlgmr.msrb.gmra.mxu2 %v1115_v21  ;;  %1270 = vmatmul.bf16.vlgmr.msrb.gmra.mxu3 %v1116_v22 }
 0x303   :  { %v1258_v24 = vpop.f32.mrf.mxu2  ;;  %v1271_v25 = vpop.f32.mrf.mxu3 }
 0x304   :  { %v1259_v26 = vadd.f32 %v1958_v23, %v1258_v24 }
 0x306   :  { %v1272_v27 = vadd.f32 %v1271_v25, %v1259_v26 }
 0x308   :  { %1275 = vmax.xlane.f32.xlu0 %v1272_v27 }
 0x30b   :  { %v1260_v28 = vpop.f32.mrf.mxu2  ;;  %v1273_v29 = vpop.f32.mrf.mxu3 }
 0x37b   :  { %v1276_v30 = vpop.xlane.xlu0 %1275 }
 0x37c   :  { %v1277_v31 = vsub.f32 %v1272_v27, %v1276_v30 }
 0x37e   :  { %v1278_v32 = vmul.f32 1.442695, %v1277_v31 }
 0x380   :  { %1963 = vpow2.f32 %v1278_v32 }
 0x386   :  { %v1964_v33 = vpop.eup %1963 }
 0x387   :  { %1280 = vadd.xlane.f32.xlu0 %v1964_v33 }
 0x3fa   :  { %v1281_v34 = vpop.xlane.xlu0 %1280 }
 0x3fb   :  { %1965 = vrcp.f32 %v1281_v34 }
 0x401   :  { %v1966_v35 = vpop.eup %1965 }
 0x402   :  { %v1283_v36 = vmul.f32 %v1966_v35, %v1964_v33 }
 0x404   :  { %v1284_v37 = vpack.c.bf16 %v1283_v36, %v1283_v36 }
 0x406   :  { %1285 = vst [vmem:[#allocation14] sm:$0xf] %v1284_v37 }
 0x407   :  { %1296 = dma.vmem_to_hbm [thread:$0]  %s1292_s15, 64, %s1294_s7, [#allocation4]  }
 0x408   :  { %2167 = dma.done.wait [#allocation4], 64  }
 0x409   :  { %2168 = vsyncadd [#allocation4], 4294967232 }
 0x40a   :  { %1301 = vsyncpa [#allocation3], 1 }
 0x40b   :  { %1302 = vsyncpa [#allocation6], 1 }
 0x40c   :  { %1303 = vsyncpa [#allocation9], 1 }
 0x40d   :  { %1304 = vsyncpa [#allocation12], 1 }
 0x40e   :  { %1305 = vsyncpa [#allocation4], 1 }

</bundles_post_ra>
